<compile_context>
chip_gen: v7x
topology: tpu7x:2x2x1
jax: 0.10.0
libtpu: 0.0.40
codegen_flags: <defaults>
</compile_context>

<pallas_src>
import jax
import jax.numpy as jnp
from jax.experimental import pallas as pl
from jax.experimental.pallas import tpu as pltpu


# --------------------------------------------------------------------------
# in-kernel math helpers
# --------------------------------------------------------------------------
def _gelu_tanh(x):
    # tanh-approximate GELU: 0.5*x*(1 + tanh(sqrt(2/pi)*(x + 0.044715 x^3)))
    # TODO(synk): torch.nn.GELU() default is the exact erf formulation; the
    # tanh approximation used here differs by < ~1e-3 absolute per element.
    c = 0.7978845608028654  # sqrt(2/pi)
    return 0.5 * x * (1.0 + jnp.tanh(c * (x + 0.044715 * x * x * x)))


# --------------------------------------------------------------------------
# kernel: one grid step = one (TN rows) x (TH hidden) slice of the MLP
# --------------------------------------------------------------------------
def gated_mlp_kernel(
    x_ref,      # (TN, D)      packed rows (batch*seq flattened)
    wu1_ref,    # (D, TH)      up_proj1 weight slice
    bu1_ref,    # (1, TH)      up_proj1 bias slice
    wu2_ref,    # (D, TH)      up_proj2 weight slice
    bu2_ref,    # (1, TH)      up_proj2 bias slice
    wd_ref,     # (TH, Dout)   down_proj weight slice
    bd_ref,     # (1, Dout)    down_proj bias (full)
    o_ref,      # (TN, Dout)
    acc_ref,    # (TN, Dout)   f32 VMEM accumulator scratch
):
    h = pl.program_id(1)

    @pl.when(h == 0)
    def _():
        acc_ref[...] = jnp.zeros_like(acc_ref)

    # Native-dtype operands into the MXU; f32 accumulation via
    # preferred_element_type. Only the elementwise epilogue is f32.
    x = x_ref[...]
    up1 = jnp.dot(x, wu1_ref[...], preferred_element_type=jnp.float32)
    up1 = up1 + bu1_ref[...].astype(jnp.float32)
    up2 = jnp.dot(x, wu2_ref[...], preferred_element_type=jnp.float32)
    up2 = up2 + bu2_ref[...].astype(jnp.float32)

    gated = _gelu_tanh(up1) * up2                      # (TN, TH) f32

    acc_ref[...] += jnp.dot(gated.astype(wd_ref.dtype), wd_ref[...],
                            preferred_element_type=jnp.float32)

    @pl.when(h == pl.num_programs(1) - 1)
    def _():
        o_ref[...] = (acc_ref[...]
                      + bd_ref[...].astype(jnp.float32)).astype(o_ref.dtype)


# --------------------------------------------------------------------------
# wrapper
# --------------------------------------------------------------------------
def _round_up(v, m):
    return -(-v // m) * m


def _pick_hidden_tile(H, target):
    """Largest multiple of 128 that divides H and is <= target; else full H."""
    best = None
    t = 128
    while t <= min(target, H):
        if H % t == 0:
            best = t
        t += 128
    return best if best is not None else H


def gated_mlp(x, params, *, block_rows=256, block_hidden=512):
    wu1, bu1 = params["wu1"], params["bu1"]
    wu2, bu2 = params["wu2"], params["bu2"]
    wd, bd = params["wd"], params["bd"]

    D = x.shape[-1]
    H, Dout = wd.shape
    lead = x.shape[:-1]
    N = 1
    for s in lead:
        N *= s
    x2 = x.reshape(N, D)

    # ---- row tiling (no jnp.pad: Pallas masks the partial last tile) -----
    TN = max(8, _round_up(min(block_rows, N), 8))
    # Guarantee >=2 row steps so the "parallel" axis can shard across the two
    # TensorCores on v7x megacore when there is more than one sublane of rows.
    if -(-N // TN) < 2 and N > 8:
        TN = max(8, _round_up(-(-N // 2), 8))
    n_row_tiles = -(-N // TN)

    # ---- hidden tiling (128-lane aligned; bounds resident weight VMEM) ---
    TH = _pick_hidden_tile(H, block_hidden)
    n_h_tiles = H // TH
    # Note: Dout is used as a full-dim block; a multiple of 128 keeps the
    # output stores lane-dense (unmasked vst).

    # ---- advisory cost estimate ------------------------------------------
    x_item = x.dtype.itemsize
    w_item = wd.dtype.itemsize
    flops = 2 * N * D * (2 * H) + 2 * N * H * Dout + 10 * N * H
    bytes_accessed = int(
        x2.size * x_item + N * Dout * x_item
        + (wu1.size + wu2.size + wd.size + bu1.size + bu2.size + bd.size) * w_item)
    cost = pl.CostEstimate(flops=flops, transcendentals=N * H,
                           bytes_accessed=bytes_accessed)

    # ---- generation-aware scoped-VMEM budget ------------------------------
    vmem_need = (
        2 * TN * D * x_item                               # x tiles (dbl-buffered)
        + 2 * TN * Dout * x_item                          # out tiles
        + 2 * (2 * D * TH + 2 * TH + TH * Dout) * w_item  # up/down weight+bias tiles
        + 2 * Dout * w_item                               # down-proj bias
        + TN * Dout * 4                                   # f32 accumulator scratch
        + 3 * TN * TH * 4                                 # up1/up2/gated intermediates
    )
    try:
        vmem_cap = int(pltpu.get_tpu_info().vmem_capacity_bytes)
    except Exception:
        vmem_cap = 64 << 20                               # conservative (v7x physical)
    vmem_limit = int(min(max(int(vmem_need * 1.25), 16 << 20),
                         int(vmem_cap * 0.85)))

    out = pl.pallas_call(
        gated_mlp_kernel,
        out_shape=jax.ShapeDtypeStruct((N, Dout), x.dtype),
        grid=(n_row_tiles, n_h_tiles),
        in_specs=[
            pl.BlockSpec((TN, D),    lambda i, h: (i, 0)),   # x
            pl.BlockSpec((D, TH),    lambda i, h: (0, h)),   # wu1
            pl.BlockSpec((1, TH),    lambda i, h: (0, h)),   # bu1
            pl.BlockSpec((D, TH),    lambda i, h: (0, h)),   # wu2
            pl.BlockSpec((1, TH),    lambda i, h: (0, h)),   # bu2
            pl.BlockSpec((TH, Dout), lambda i, h: (h, 0)),   # wd
            pl.BlockSpec((1, Dout),  lambda i, h: (0, 0)),   # bd
        ],
        out_specs=pl.BlockSpec((TN, Dout), lambda i, h: (i, 0)),
        scratch_shapes=[pltpu.VMEM((TN, Dout), jnp.float32)],
        compiler_params=pltpu.CompilerParams(
            dimension_semantics=("parallel", "arbitrary"),
            vmem_limit_bytes=vmem_limit),
        cost_estimate=cost,
    )(x2, wu1, bu1, wu2, bu2, wd, bd)

    return out.reshape(*lead, Dout)


# --------------------------------------------------------------------------
# pure-JAX reference (same tanh-GELU) for a sanity check
# --------------------------------------------------------------------------
def gated_mlp_ref(x, params):
    left = _gelu_tanh(x @ params["wu1"] + params["bu1"])
    right = x @ params["wu2"] + params["bu2"]
    return (left * right) @ params["wd"] + params["bd"]


# --------------------------------------------------------------------------
# deterministic parameter construction (matches GatedMLP.reset_parameters:
# weights ~ N(0, in_features**0.5); biases keep nn.Linear's default uniform)
# --------------------------------------------------------------------------
def init_params(key, in_dim, hidden_dim, out_dim):
    ks = jax.random.split(key, 6)

    def lin_bias(k, fan_in, n):
        bound = 1.0 / (fan_in ** 0.5)
        return jax.random.uniform(k, (1, n), jnp.float32, -bound, bound)

    return dict(
        wu1=jax.random.normal(ks[0], (in_dim, hidden_dim), jnp.float32) * (in_dim ** 0.5),
        bu1=lin_bias(ks[1], in_dim, hidden_dim),
        wu2=jax.random.normal(ks[2], (in_dim, hidden_dim), jnp.float32) * (in_dim ** 0.5),
        bu2=lin_bias(ks[3], in_dim, hidden_dim),
        wd=jax.random.normal(ks[4], (hidden_dim, out_dim), jnp.float32) * (hidden_dim ** 0.5),
        bd=lin_bias(ks[5], hidden_dim, out_dim),
    )


if __name__ == "__main__":
    # Small shapes that still exercise both grid axes:
    #   N = 2*8 = 16 rows -> 2 row tiles of 8;  H = 384 -> 3 hidden tiles of 128.
    B, L, D, H = 2, 8, 256, 384   # batch, seq, in/out dim, mlp hidden
    key = jax.random.PRNGKey(0)
    kx, kp = jax.random.split(key)

    x = jax.random.normal(kx, (B, L, D), jnp.float32)
    params = init_params(kp, D, H, D)

    out = gated_mlp(x, params)
    jax.block_until_ready(out)

    assert out.shape == (B, L, D) and out.dtype == jnp.float32
    assert bool(jnp.all(jnp.isfinite(out)))

    ref = gated_mlp_ref(x, params)
    rel_err = float(jnp.max(jnp.abs(out - ref)) / (jnp.max(jnp.abs(ref)) + 1.0))
    assert rel_err < 1e-2, f"relative error too large: {rel_err}"

    print("KERNEL_OK")
</pallas_src>

<mosaic_0001>
module attributes {stable_mosaic.version = 11 : i64} {
  func.func @gated_mlp_kernel(%arg0: i32, %arg1: i32, %arg2: memref<8x256xf32, #tpu.memory_space<vmem>>, %arg3: memref<256x384xf32, #tpu.memory_space<vmem>>, %arg4: memref<1x384xf32, #tpu.memory_space<vmem>>, %arg5: memref<256x384xf32, #tpu.memory_space<vmem>>, %arg6: memref<1x384xf32, #tpu.memory_space<vmem>>, %arg7: memref<384x256xf32, #tpu.memory_space<vmem>>, %arg8: memref<1x256xf32, #tpu.memory_space<vmem>>, %arg9: memref<8x256xf32, #tpu.memory_space<vmem>>, %arg10: memref<8x256xf32, #tpu.memory_space<vmem>>) attributes {dimension_semantics = [#tpu.dimension_semantics<parallel>, #tpu.dimension_semantics<arbitrary>], iteration_bounds = array<i64: 2, 1>, scalar_prefetch = 0 : i64, scratch_operands = 1 : i64, tpu.core_type = #tpu.core_type<tc>, window_params = [{transform_indices = @transform_0, window_bounds = array<i64: 8, 256>}, {transform_indices = @transform_1, window_bounds = array<i64: 256, 384>}, {transform_indices = @transform_2, window_bounds = array<i64: 1, 384>}, {transform_indices = @transform_3, window_bounds = array<i64: 256, 384>}, {transform_indices = @transform_4, window_bounds = array<i64: 1, 384>}, {transform_indices = @transform_5, window_bounds = array<i64: 384, 256>}, {pipeline_mode = #tpu.pipeline_mode<synchronous>, transform_indices = @transform_6, window_bounds = array<i64: 1, 256>}, {transform_indices = @transform_7, window_bounds = array<i64: 8, 256>}]} {
    %c0_i32 = arith.constant 0 : i32
    %0 = arith.cmpi eq, %arg1, %c0_i32 : i32
    %1 = arith.extui %0 : i1 to i32
    %c0_i32_0 = arith.constant 0 : i32
    %2 = arith.cmpi ne, %1, %c0_i32_0 : i32
    scf.if %2 {
      %cst_24 = arith.constant 0.000000e+00 : f32
      %36 = vector.broadcast %cst_24 : f32 to vector<8x256xf32>
      %c0_25 = arith.constant 0 : index
      %c0_26 = arith.constant 0 : index
      %37 = vector.load %arg10[%c0_25, %c0_26] : memref<8x256xf32, #tpu.memory_space<vmem>>, vector<8x256xf32>
      tpu.vector_store %arg10[%c0_25, %c0_26], %36 {strides = array<i32>} : memref<8x256xf32, #tpu.memory_space<vmem>>, vector<8x256xf32>,
    } else {
    }
    %c0 = arith.constant 0 : index
    %c0_1 = arith.constant 0 : index
    %3 = vector.load %arg2[%c0, %c0_1] : memref<8x256xf32, #tpu.memory_space<vmem>>, vector<8x256xf32>
    %c0_2 = arith.constant 0 : index
    %c0_3 = arith.constant 0 : index
    %4 = vector.load %arg3[%c0_2, %c0_3] : memref<256x384xf32, #tpu.memory_space<vmem>>, vector<256x384xf32>
    %cst = arith.constant dense<0.000000e+00> : vector<8x384xf32>
    %5 = tpu.matmul %3, %4, %cst {dimension_numbers = #tpu.dot_dimension_numbers<[1], [0], [0], [1], [0, 0, 1, 1], [], []>} : vector<8x256xf32>, vector<256x384xf32>, vector<8x384xf32> -> vector<8x384xf32>
    %c0_4 = arith.constant 0 : index
    %c0_5 = arith.constant 0 : index
    %6 = vector.load %arg4[%c0_4, %c0_5] : memref<1x384xf32, #tpu.memory_space<vmem>>, vector<1x384xf32>
    %7 = vector.broadcast %6 : vector<1x384xf32> to vector<8x384xf32>
    %8 = arith.addf %5, %7 : vector<8x384xf32>
    %c0_6 = arith.constant 0 : index
    %c0_7 = arith.constant 0 : index
    %9 = vector.load %arg5[%c0_6, %c0_7] : memref<256x384xf32, #tpu.memory_space<vmem>>, vector<256x384xf32>
    %cst_8 = arith.constant dense<0.000000e+00> : vector<8x384xf32>
    %10 = tpu.matmul %3, %9, %cst_8 {dimension_numbers = #tpu.dot_dimension_numbers<[1], [0], [0], [1], [0, 0, 1, 1], [], []>} : vector<8x256xf32>, vector<256x384xf32>, vector<8x384xf32> -> vector<8x384xf32>
    %c0_9 = arith.constant 0 : index
    %c0_10 = arith.constant 0 : index
    %11 = vector.load %arg6[%c0_9, %c0_10] : memref<1x384xf32, #tpu.memory_space<vmem>>, vector<1x384xf32>
    %12 = vector.broadcast %11 : vector<1x384xf32> to vector<8x384xf32>
    %13 = arith.addf %10, %12 : vector<8x384xf32>
    %cst_11 = arith.constant 5.000000e-01 : f32
    %14 = vector.broadcast %cst_11 : f32 to vector<8x384xf32>
    %15 = arith.mulf %14, %8 : vector<8x384xf32>
    %cst_12 = arith.constant 4.471500e-02 : f32
    %16 = vector.broadcast %cst_12 : f32 to vector<8x384xf32>
    %17 = arith.mulf %16, %8 : vector<8x384xf32>
    %18 = arith.mulf %17, %8 : vector<8x384xf32>
    %19 = arith.mulf %18, %8 : vector<8x384xf32>
    %20 = arith.addf %8, %19 : vector<8x384xf32>
    %cst_13 = arith.constant 0.797884583 : f32
    %21 = vector.broadcast %cst_13 : f32 to vector<8x384xf32>
    %22 = arith.mulf %21, %20 : vector<8x384xf32>
    %23 = math.tanh %22 : vector<8x384xf32>
    %cst_14 = arith.constant 1.000000e+00 : f32
    %24 = vector.broadcast %cst_14 : f32 to vector<8x384xf32>
    %25 = arith.addf %24, %23 : vector<8x384xf32>
    %26 = arith.mulf %15, %25 : vector<8x384xf32>
    %27 = arith.mulf %26, %13 : vector<8x384xf32>
    %c0_15 = arith.constant 0 : index
    %c0_16 = arith.constant 0 : index
    %28 = vector.load %arg10[%c0_15, %c0_16] : memref<8x256xf32, #tpu.memory_space<vmem>>, vector<8x256xf32>
    %c0_17 = arith.constant 0 : index
    %c0_18 = arith.constant 0 : index
    %29 = vector.load %arg7[%c0_17, %c0_18] : memref<384x256xf32, #tpu.memory_space<vmem>>, vector<384x256xf32>
    %cst_19 = arith.constant dense<0.000000e+00> : vector<8x256xf32>
    %30 = tpu.matmul %27, %29, %cst_19 {dimension_numbers = #tpu.dot_dimension_numbers<[1], [0], [0], [1], [0, 0, 1, 1], [], []>} : vector<8x384xf32>, vector<384x256xf32>, vector<8x256xf32> -> vector<8x256xf32>
    %31 = arith.addf %28, %30 : vector<8x256xf32>
    %c0_20 = arith.constant 0 : index
    %c0_21 = arith.constant 0 : index
    %32 = vector.load %arg10[%c0_20, %c0_21] : memref<8x256xf32, #tpu.memory_space<vmem>>, vector<8x256xf32>
    tpu.vector_store %arg10[%c0_20, %c0_21], %31 {strides = array<i32>} : memref<8x256xf32, #tpu.memory_space<vmem>>, vector<8x256xf32>,
    %c0_i32_22 = arith.constant 0 : i32
    %33 = arith.cmpi eq, %arg1, %c0_i32_22 : i32
    %34 = arith.extui %33 : i1 to i32
    %c0_i32_23 = arith.constant 0 : i32
    %35 = arith.cmpi ne, %34, %c0_i32_23 : i32
    scf.if %35 {
      %c0_24 = arith.constant 0 : index
      %c0_25 = arith.constant 0 : index
      %36 = vector.load %arg10[%c0_24, %c0_25] : memref<8x256xf32, #tpu.memory_space<vmem>>, vector<8x256xf32>
      %c0_26 = arith.constant 0 : index
      %c0_27 = arith.constant 0 : index
      %37 = vector.load %arg8[%c0_26, %c0_27] : memref<1x256xf32, #tpu.memory_space<vmem>>, vector<1x256xf32>
      %38 = vector.broadcast %37 : vector<1x256xf32> to vector<8x256xf32>
      %39 = arith.addf %36, %38 : vector<8x256xf32>
      %c0_28 = arith.constant 0 : index
      %c0_29 = arith.constant 0 : index
      %40 = vector.load %arg9[%c0_28, %c0_29] : memref<8x256xf32, #tpu.memory_space<vmem>>, vector<8x256xf32>
      tpu.vector_store %arg9[%c0_28, %c0_29], %39 {strides = array<i32>} : memref<8x256xf32, #tpu.memory_space<vmem>>, vector<8x256xf32>,
    } else {
    }
    return
  }
  func.func @transform_0(%arg0: i32, %arg1: i32) -> (i32, i32) {
    %c0_i32 = arith.constant 0 : i32
    %c0_i32_0 = arith.constant 0 : i32
    return %arg0, %c0_i32 : i32, i32
  }
  func.func @transform_1(%arg0: i32, %arg1: i32) -> (i32, i32) {
    %c0_i32 = arith.constant 0 : i32
    %c0_i32_0 = arith.constant 0 : i32
    return %c0_i32, %arg1 : i32, i32
  }
  func.func @transform_2(%arg0: i32, %arg1: i32) -> (i32, i32) {
    %c0_i32 = arith.constant 0 : i32
    %c0_i32_0 = arith.constant 0 : i32
    return %c0_i32, %arg1 : i32, i32
  }
  func.func @transform_3(%arg0: i32, %arg1: i32) -> (i32, i32) {
    %c0_i32 = arith.constant 0 : i32
    %c0_i32_0 = arith.constant 0 : i32
    return %c0_i32, %arg1 : i32, i32
  }
  func.func @transform_4(%arg0: i32, %arg1: i32) -> (i32, i32) {
    %c0_i32 = arith.constant 0 : i32
    %c0_i32_0 = arith.constant 0 : i32
    return %c0_i32, %arg1 : i32, i32
  }
  func.func @transform_5(%arg0: i32, %arg1: i32) -> (i32, i32) {
    %c0_i32 = arith.constant 0 : i32
    %c0_i32_0 = arith.constant 0 : i32
    return %arg1, %c0_i32 : i32, i32
  }
  func.func @transform_6(%arg0: i32, %arg1: i32) -> (i32, i32) {
    %c0_i32 = arith.constant 0 : i32
    %c0_i32_0 = arith.constant 0 : i32
    %c0_i32_1 = arith.constant 0 : i32
    return %c0_i32, %c0_i32_0 : i32, i32
  }
  func.func @transform_7(%arg0: i32, %arg1: i32) -> (i32, i32) {
    %c0_i32 = arith.constant 0 : i32
    %c0_i32_0 = arith.constant 0 : i32
    return %arg0, %c0_i32 : i32, i32
  }
}

</mosaic_0001>

<bundles_post_ra>
// kernel: tpu_custom_call.1
= control target key start
LH: loop header
LB: loop body
LE: loop exit
PB: predicated region body
PF: predicated region fallthrough
CT: control target
= control target key end

     0   :  { %s2442_s0 = inlined_call_operand.hbm [shape: f32[16,256], index: 0, kind: input, shape index: {}]   ;;  %s2443_s1 = inlined_call_operand.hbm [shape: f32[256,384], index: 1, kind: input, shape index: {}]   ;;  %s2444_s2 = inlined_call_operand.vmem [shape: f32[1,384], index: 2, kind: input, shape index: {}]   ;;  %s2445_s3 = inlined_call_operand.hbm [shape: f32[256,384], index: 3, kind: input, shape index: {}]   ;;  %s2446_s4 = inlined_call_operand.vmem [shape: f32[1,384], index: 4, kind: input, shape index: {}]   ;;  %s2447_s5 = inlined_call_operand.hbm [shape: f32[384,256], index: 5, kind: input, shape index: {}]   ;;  %s2448_s6 = inlined_call_operand.vmem [shape: f32[1,256], index: 6, kind: input, shape index: {}]   ;;  %s2449_s7 = inlined_call_operand.hbm [shape: f32[16,256], index: 7, kind: output, shape index: {}]  }
   0x1   :  { %2457 = sst [smem:[#allocation18_spill]] %s2448_s6 }
   0x2   :  { %2458 = sst [smem:[#allocation19_spill]] %s2449_s7 }
   0x3   :  { %12 = vsyncpa [#allocation4], 0 }
   0x4   :  { %14 = vsyncpa [#allocation4 + $0x1], 0 }
   0x5   :  { %15 = vsyncpa [#allocation7], 0 }
   0x6   :  { %16 = vsyncpa [#allocation10], 0 }
   0x7   :  { %17 = vsyncpa [#allocation5], 0 }
   0x8   :  { %19 = vsyncpa [#allocation5 + $0x1], 0  ;;  %s2125_s24 = smov 0   ;;  %s2127_s25 = smov 0  }
   0x9   :  { %s2129_s26 = smov 0   ;;  %s2131_s27 = smov 0  }
   0xa   :  { %s2133_s28 = smov 0   ;;  %s2135_s29 = smov 0  }
   0xb LB: > { %2459 = sst [smem:[#allocation16_spill]] %s2053_s24  ;;  %s1380_s30 = sadd.s32 4294967295, %s2073_s29   ;;  %s2073_s29 = sphi %s2135_s29, %s25_s29   ;;  %s2069_s28 = sphi %s2133_s28, %s2484_s28   ;;  %s2065_s27 = sphi %s2131_s27, %s2483_s27   ;;  %s2061_s26 = sphi %s2129_s26, %s2482_s26   ;;  %s2057_s25 = sphi %s2127_s25, %s2481_s25   ;;  %s2053_s24 = sphi %s2125_s24, %s2480_s24  }
   0xc   : > { %s1381_s8 = sadd.s32 4294967294, %s2073_s29   ;;  %p57_p0 = scmp.ne.s32.totalorder %s2057_s25, %s2053_s24 }
   0xd   : > { %p2159_p1 = scmp.eq.s32.totalorder %s1380_s30, 0  ;;  %p2163_p2 = scmp.eq.s32.totalorder %s1380_s30, 1 }
   0xe   : > { %p238_p3 = scmp.eq.s32.totalorder %s1381_s8, 1  ;;  %p1382_p5 = scmp.ge.s32.totalorder %s2073_s29, 1 }
   0xf   : > { %s2460_s9 = scalar_select %p2159_p1, 1, 0 }
  0x10   : > { %s2461_s10 = scalar_select %p2163_p2, 1, 0 }
  0x11   : > { %p2169_p4 = por %p2159_p1, %p57_p0  ;;  %p2174_p6 = por %p238_p3, %p57_p0 }
  0x12   : > { %p245_p7 = scmp.lt.s32.totalorder %s2073_s29, 3  ;;  %s2075_s14 = smov [#allocation6]  }
  0x13   : > { %s2462_s11 = scalar_select %p2169_p4, 1, 0 }
  0x14   : > { %s2463_s12 = scalar_select %p2174_p6, 1, 0 }
  0x15   : > { %p2179_p8 = pnand %p1382_p5, %p245_p7  ;;  %s260_s15 = sshll.u32 %s2075_s14, 4  ;;  %s2183_s15 = int_to_ptr.vmem [resolvable:$true] %s260_s15 }
  0x16   : > { %2464 = sst [smem:[#allocation17_spill]] %s2463_s12  ;;  %s2076_s17 = smov [#allocation8]  }
  0x17   : > { %s2465_s13 = scalar_select %p2179_p8, 1, 0 }
  0x18   : > { %p1781_p9 = pneg %p2179_p8  ;;  %s284_s18 = sshll.u32 %s2076_s17, 4  ;;  %s2194_s18 = int_to_ptr.vmem [resolvable:$true] %s284_s18 }
  0x19   : > { %s2077_s19 = smov [#allocation9]   ;;  %s1869_s23 = scalar_lea.hbm %s2443_s1, 12288 }
  0x1a   : > { %p2190_p11 = pnand %p1781_p9, %p2159_p1  ;;  %s2196_s20 = sshll.u32 %s2077_s19, 4  ;;  %s310_s20 = int_to_ptr.vmem [resolvable:$true] %s2196_s20 }
  0x1b   : > { %p1870_p12 = scmp.ne.s32.totalorder %s2443_s1, %s1869_s23  ;;  %p1876_p5 = scmp.lt.u32.totalorder %s1869_s23, %s2443_s1 }
  0x1c   : > { %p2206_p13 = pneg %p2190_p11 }
  0x1e   : > { %p1872_p0 = pnand %p2206_p13, %p1870_p12 }
  0x20   : > { %p1873_p3 = pneg %p1872_p0 }
  0x22   : > { %p1878_p7 = pnand %p1876_p5, %p1873_p3 }
  0x24   : > { %1881 = shalt.err (!%p1878_p7)
}
  0x25   : > { %s1882_s21 = scalar_lea.vmem %s2183_s15, 12288  ;;  %p1890_p1 = scmp.lt.s32.totalorder %s2183_s15, %s2183_s15 }
  0x26   : > { %p1883_p9 = scmp.ne.s32.totalorder %s2183_s15, %s1882_s21  ;;  %p1891_p4 = scmp.lt.s32.totalorder %s1882_s21, %s1882_s21 }
  0x28   : > { %p1885_p10 = pnand %p1883_p9, %p2206_p13  ;;  %p1892_p12 = por %p1891_p4, %p1890_p1 }
  0x2a   : > { %p1886_p6 = pneg %p1885_p10 }
  0x2c   : > { %p1893_p0 = pnand %p1892_p12, %p1886_p6 }
  0x2e   : > { %1896 = shalt.err (!%p1893_p0)
}
  0x2f   : > { %s2078_s22 = smov 384   ;;  %s2079_s23 = smov 24  }
  0x30   : > { %1784 = dma.hbm_to_vmem [thread:$0]  (!%p2190_p11), %s2443_s1, 12288, %s2183_s15, [#allocation7], %s2078_s22, %s2078_s22, %s2079_s23  }
  0x31   : > { %s1897_s12 = scalar_lea.hbm %s2445_s3, 12288 }
  0x32   : > { %p1898_p1 = scmp.ne.s32.totalorder %s2445_s3, %s1897_s12  ;;  %p1904_p10 = scmp.lt.u32.totalorder %s1897_s12, %s2445_s3 }
  0x34   : > { %p1900_p4 = pnand %p1898_p1, %p2206_p13 }
  0x36   : > { %p1901_p6 = pneg %p1900_p4 }
  0x38   : > { %p1906_p3 = pnand %p1904_p10, %p1901_p6 }
  0x3a   : > { %1909 = shalt.err (!%p1906_p3)
}
  0x3b   : > { %s1910_s15 = scalar_lea.vmem %s2194_s18, 12288  ;;  %p1918_p12 = scmp.lt.s32.totalorder %s2194_s18, %s2194_s18 }
  0x3c   : > { %p1911_p5 = scmp.ne.s32.totalorder %s2194_s18, %s1910_s15  ;;  %p1919_p0 = scmp.lt.s32.totalorder %s1910_s15, %s1910_s15 }
  0x3e   : > { %p1913_p7 = pnand %p1911_p5, %p2206_p13  ;;  %p1920_p1 = por %p1919_p0, %p1918_p12 }
  0x40   : > { %p1914_p9 = pneg %p1913_p7 }
  0x42   : > { %p1921_p4 = pnand %p1920_p1, %p1914_p9 }
  0x44   : > { %1924 = shalt.err (!%p1921_p4)
}
  0x45   : > { %1787 = dma.hbm_to_vmem [thread:$0]  (!%p2190_p11), %s2445_s3, 12288, %s2194_s18, [#allocation7], %s2078_s22, %s2078_s22, %s2079_s23  }
  0x46   : > { %s1925_s30 = scalar_lea.hbm %s2447_s5, 12288 }
  0x47   : > { %p1926_p6 = scmp.ne.s32.totalorder %s2447_s5, %s1925_s30  ;;  %p1932_p5 = scmp.lt.u32.totalorder %s1925_s30, %s2447_s5 }
  0x49   : > { %p1928_p10 = pnand %p1926_p6, %p2206_p13 }
  0x4b   : > { %p1929_p3 = pneg %p1928_p10 }
  0x4d   : > { %p1934_p7 = pnand %p1932_p5, %p1929_p3 }
  0x4f   : > { %1937 = shalt.err (!%p1934_p7)
}
  0x50   : > { %s1938_s15 = scalar_lea.vmem %s310_s20, 12288  ;;  %p1946_p1 = scmp.lt.s32.totalorder %s310_s20, %s310_s20 }
  0x51   : > { %p1939_p9 = scmp.ne.s32.totalorder %s310_s20, %s1938_s15  ;;  %p1947_p4 = scmp.lt.s32.totalorder %s1938_s15, %s1938_s15 }
  0x53   : > { %p1941_p12 = pnand %p1939_p9, %p2206_p13  ;;  %p1948_p8 = por %p1947_p4, %p1946_p1 }
  0x55   : > { %p1942_p0 = pneg %p1941_p12 }
  0x57   : > { %p1949_p2 = pnand %p1948_p8, %p1942_p0 }
  0x59   : > { %1952 = shalt.err (!%p1949_p2)
}
  0x5a   : > { %s2080_s18 = smov 256   ;;  %s2081_s14 = smov 16  }
  0x5b   : > { %1790 = dma.hbm_to_vmem [thread:$0]  (!%p2190_p11), %s2447_s5, 12288, %s310_s20, [#allocation10], %s2080_s18, %s2080_s18, %s2081_s14  }
  0x5c   : > { %s44_s6 = sadd.s32 1, %s2061_s26  ;;  %s37_s7 = sadd.s32 1, %s2069_s28 }
  0x5d   : > { %p51_p2 = scmp.ne.s32.totalorder %s2061_s26, %s2057_s25  ;;  %p39_p8 = scmp.ge.s32.totalorder %s37_s7, 2 }
  0x5e   : > { %p52_p13 = scmp.eq.s32.totalorder %s2073_s29, 0  ;;  %p2468_p6 = scmp.ne.s32.totalorder %s2461_s10, 0 }
  0x5f   : > { %p1802_p3 = scmp.lt.s32.totalorder %s2073_s29, 2  ;;  %s2486_s7 = smov (%p39_p8, %s37_s7), 0 }
  0x60   : > { %p2276_p10 = por %p2468_p6, %p51_p2  ;;  %p53_p5 = por %p52_p13, %p51_p2 }
  0x61   : > { %s326_s16 = sand.u32 1, %s2061_s26   ;;  %s41_s12 = ssub.s32 %s2069_s28, %s2486_s7 }
  0x62   : > { %p42_p7 = scmp.eq.s32.totalorder %s41_s12, 0  ;;  %s1389_s20 = sshll.u32 %s326_s16, 4 }
  0x63   : > { %s1403_s30 = sshll.u32 %s2069_s28, 8  ;;  %s330_s21 = scalar_lea.vmem [#allocation3], %s1389_s20 }
  0x64   : > { %s2288_s8 = scalar_select %p42_p7, %s2061_s26, %s44_s6  }
  0x65   : > { %s2293_s10 = scalar_lea.hbm %s2442_s0, %s1403_s30  ;;  %s338_s15 = sshll.u32 %s330_s21, 4  ;;  %s2295_s15 = int_to_ptr.vmem [resolvable:$true] %s338_s15 }
  0x66   : > { %p2299_p11 = pnand %p1802_p3, %p53_p5  ;;  %s327_s14 = scalar_lea.sflag [#allocation4], %s326_s16 }
  0x67   : > { %s1953_s22 = scalar_lea.hbm %s2293_s10, 256  ;;  %s1958_s12 = scalar_lea.hbm %s2442_s0, 512 }
  0x68   : > { %p1954_p9 = scmp.ne.s32.totalorder %s2293_s10, %s1953_s22  ;;  %p1955_p12 = pneg %p2299_p11 }
  0x69   : > { %p1959_p4 = scmp.lt.u32.totalorder %s2293_s10, %s2442_s0  ;;  %p1960_p2 = scmp.lt.u32.totalorder %s1958_s12, %s1953_s22 }
  0x6a   : > { %p1956_p0 = pnand %p1955_p12, %p1954_p9  ;;  %p1962_p13 = scmp.lt.u32.totalorder %s1953_s22, %s2293_s10 }
  0x6b   : > { %p1961_p8 = por %p1960_p2, %p1959_p4 }
  0x6c   : > { %p1957_p1 = pneg %p1956_p0 }
  0x6d   : > { %p1963_p6 = por %p1962_p13, %p1961_p8 }
  0x6f   : > { %p1964_p3 = pnand %p1963_p6, %p1957_p1 }
  0x71   : > { %1967 = shalt.err (!%p1964_p3)
}
  0x72   : > { %s1968_s16 = scalar_lea.vmem %s2295_s15, 256  ;;  %s2082_s17 = smov [#allocation3]  }
  0x73   : > { %p1969_p5 = scmp.ne.s32.totalorder %s2295_s15, %s1968_s16  ;;  %s1973_s19 = sshll.u32 %s2082_s17, 4  ;;  %s1974_s19 = int_to_ptr.vmem [resolvable:$false] %s1973_s19 }
  0x74   : > { %s1975_s21 = scalar_lea.vmem %s1974_s19, 512  ;;  %p1976_p0 = scmp.lt.s32.totalorder %s2295_s15, %s1974_s19 }
  0x75   : > { %p1971_p7 = pnand %p1969_p5, %p1955_p12  ;;  %p1977_p4 = scmp.lt.s32.totalorder %s1975_s21, %s1968_s16 }
  0x77   : > { %p1972_p9 = pneg %p1971_p7  ;;  %p1978_p2 = por %p1977_p4, %p1976_p0 }
  0x79   : > { %p1979_p8 = pnand %p1978_p2, %p1972_p9 }
  0x7b   : > { %1982 = shalt.err (!%p1979_p8)
}
  0x7c   : > { %1794 = dma.hbm_to_vmem [thread:$0]  (!%p2299_p11), %s2293_s10, 256, %s2295_s15, %s327_s14  }
  0x7d   : > { %p2471_p1 = scmp.ne.s32.totalorder %s2465_s13, 0 }
  0x7e   : > { %s2331_s22 = sand.u32 (!%p2471_p1), 1, %s2057_s25   ;;  %p2472_p12 = scmp.ne.s32.totalorder (!%p2471_p1), %s2462_s11, 0 }
  0x7f   : > { %347 = sbr.rel (%p2471_p1) target bundleno = 782 (0x30e), region = 48  ;;  %s1393_s23 = sshll.u32 (!%p2471_p1), %s2331_s22, 4 }
  0x80   : > { %s350_s6 = scalar_lea.sflag (!%p2471_p1), [#allocation4], %s2331_s22  ;;  %s2337_s12 = scalar_lea.vmem (!%p2471_p1), [#allocation3], %s1393_s23 }
  0x86   : > { %2036 = dma.done.wait (%p2472_p12), %s350_s6, 256  }
  0x87   : > { %2038 = vsyncadd (%p2472_p12), %s350_s6, 4294967040  ;;  %p2473_p11 = scmp.ne.s32.totalorder %s2460_s9, 0 }
  0x89   : > { %2040 = dma.done.wait (%p2473_p11), [#allocation7], 24576  }
  0x8a   : > { %2042 = vsyncadd (%p2473_p11), [#allocation7], 4294942720 }
  0x8b   : > { %2044 = dma.done.wait (%p2473_p11), [#allocation10], 12288  }
  0x8c   : > { %2046 = vsyncadd (%p2473_p11), [#allocation10], 4294955008  ;;  %v426_v0 = vld [vmem:[#allocation6 + $0x8] sm:$0xff]  ;;  %v429_v1 = vld [vmem:[#allocation6 + $0x20] sm:$0xff]  ;;  %s2474_s14 = sld [smem:[#allocation18_spill]]  ;;  %s1404_s20 = sshll.u32 %s2065_s27, 8 }
  0x8d   : > { %v425_v2 = vld [vmem:[#allocation6] sm:$0xff]  ;;  %v1475_v3 = vpack.c.bf16 %v429_v1, %v426_v0  ;;  %v428_v4 = vld [vmem:[#allocation6 + $0x18] sm:$0xff]  ;;  %v435_v6 = vld [vmem:[#allocation6 + $0x50] sm:$0xff]  ;;  %s403_s30 = scalar_lea.vmem [#allocation11], %s1393_s23  ;;  %s2475_s21 = sld [smem:[#allocation19_spill]] }
  0x8e   : > { %v432_v5 = vld [vmem:[#allocation6 + $0x38] sm:$0xff]  ;;  %v1477_v7 = vpack.c.bf16 %v428_v4, %v425_v2  ;;  %v431_v9 = vld [vmem:[#allocation6 + $0x30] sm:$0xff]  ;;  %v434_v10 = vld [vmem:[#allocation6 + $0x48] sm:$0xff]  ;;  %s1243_s16 = sshll.u32 %s403_s30, 4  ;;  %s1229_s27 = scalar_lea.sflag [#allocation5], %s2331_s22  ;;  %s2395_s16 = int_to_ptr.vmem [resolvable:$true] %s1243_s16 }
  0x8f   : > { %v1479_v8 = vpack.c.bf16 %v435_v6, %v432_v5  ;;  %v438_v11 = vld [vmem:[#allocation6 + $0x68] sm:$0xff]  ;;  %1476 = vmatprep.subr.bf16.mxu1 %v1475_v3  ;;  %v441_v12 = vld [vmem:[#allocation6 + $0x80] sm:$0xff]  ;;  %v1481_v13 = vpack.c.bf16 %v434_v10, %v431_v9  ;;  %v440_v16 = vld [vmem:[#allocation6 + $0x78] sm:$0xff]  ;;  %s2084_s23 = smov [#allocation11]  }
  0x90   : > { %1478 = vmatpush1.bf16.msra.mxu1 %v1477_v7  ;;  %v1483_v14 = vpack.c.bf16 %v441_v12, %v438_v11  ;;  %v437_v15 = vld [vmem:[#allocation6 + $0x60] sm:$0xff]  ;;  %v444_v17 = vld [vmem:[#allocation6 + $0x98] sm:$0xff]  ;;  %v447_v18 = vld [vmem:[#allocation6 + $0xb0] sm:$0xff]  ;;  %s1987_s9 = sshll.u32 %s2084_s23, 4  ;;  %s1988_s9 = int_to_ptr.vmem [resolvable:$false] %s1987_s9 }
  0x91   : > { %1480 = vmatprep.subr.bf16.mxu1 %v1479_v8  ;;  %v1485_v19 = vpack.c.bf16 %v440_v16, %v437_v15  ;;  %v1487_v20 = vpack.c.bf16 %v447_v18, %v444_v17  ;;  %v443_v21 = vld [vmem:[#allocation6 + $0x90] sm:$0xff]  ;;  %v446_v22 = vld [vmem:[#allocation6 + $0xa8] sm:$0xff]  ;;  %v453_v24 = vld [vmem:[#allocation6 + $0xe0] sm:$0xff]  ;;  %s1989_s11 = scalar_lea.vmem %s1988_s9, 512  ;;  %p1990_p5 = scmp.lt.s32.totalorder %s2395_s16, %s1988_s9 }
  0x92   : > { %v450_v23 = vld [vmem:[#allocation6 + $0xc8] sm:$0xff]  ;;  %v1489_v25 = vpack.c.bf16 %v446_v22, %v443_v21  ;;  %v449_v27 = vld [vmem:[#allocation6 + $0xc0] sm:$0xff]  ;;  %v452_v28 = vld [vmem:[#allocation6 + $0xd8] sm:$0xff] }
  0x93   : > { %v1491_v26 = vpack.c.bf16 %v453_v24, %v450_v23  ;;  %v456_v29 = vld [vmem:[#allocation6 + $0xf8] sm:$0xff]  ;;  %v459_v30 = vld [vmem:[#allocation6 + $0x110] sm:$0xff]  ;;  %v1493_v31 = vpack.c.bf16 %v452_v28, %v449_v27  ;;  %v458_v34 = vld [vmem:[#allocation6 + $0x108] sm:$0xff]  ;;  %s2393_s6 = scalar_lea.hbm %s2475_s21, %s1404_s20 }
  0x94   : > { %1482 = vmatpush1.bf16.msra.mxu1 %v1481_v13  ;;  %v1495_v32 = vpack.c.bf16 %v459_v30, %v456_v29  ;;  %v455_v33 = vld [vmem:[#allocation6 + $0xf0] sm:$0xff]  ;;  %v462_v35 = vld [vmem:[#allocation6 + $0x128] sm:$0xff]  ;;  %v465_v36 = vld [vmem:[#allocation6 + $0x140] sm:$0xff] }
  0x95   : > { %1484 = vmatprep.subr.bf16.mxu1 %v1483_v14  ;;  %v1497_v37 = vpack.c.bf16 %v458_v34, %v455_v33  ;;  %v1499_v38 = vpack.c.bf16 %v465_v36, %v462_v35  ;;  %v461_v39 = vld [vmem:[#allocation6 + $0x120] sm:$0xff]  ;;  %v464_v40 = vld [vmem:[#allocation6 + $0x138] sm:$0xff]  ;;  %v471_v43 = vld [vmem:[#allocation6 + $0x170] sm:$0xff] }
  0x96   : > { %v2352_v41 = vld [vmem:[%s2337_s12 + $0x8] sm:$0xff]  ;;  %v1501_v44 = vpack.c.bf16 %v464_v40, %v461_v39  ;;  %v467_v46 = vld [vmem:[#allocation6 + $0x150] sm:$0xff]  ;;  %v477_v49 = vld [vmem:[#allocation6 + $0x1a0] sm:$0xff] }
  0x97   : > { %v468_v42 = vld [vmem:[#allocation6 + $0x158] sm:$0xff]  ;;  %602 = vmatprep.mubr.f32.mxu1 %v2352_v41  ;;  %927 = vmatprep.mubr.f32.mxu0 %v2352_v41  ;;  %v470_v47 = vld [vmem:[#allocation6 + $0x168] sm:$0xff]  ;;  %v473_v52 = vld [vmem:[#allocation6 + $0x180] sm:$0xff] }
  0x98   : > { %1486 = vmatpush1.bf16.msra.mxu1 %v1485_v19  ;;  %v1503_v45 = vpack.c.bf16 %v471_v43, %v468_v42  ;;  %v474_v48 = vld [vmem:[#allocation6 + $0x188] sm:$0xff]  ;;  %v1505_v50 = vpack.c.bf16 %v470_v47, %v467_v46  ;;  %v476_v53 = vld [vmem:[#allocation6 + $0x198] sm:$0xff]  ;;  %v483_v55 = vld [vmem:[#allocation6 + $0x1d0] sm:$0xff] }
  0x99   : > { %1488 = vmatprep.subr.bf16.mxu1 %v1487_v20  ;;  %v1507_v51 = vpack.c.bf16 %v477_v49, %v474_v48  ;;  %v480_v54 = vld [vmem:[#allocation6 + $0x1b8] sm:$0xff]  ;;  %v729_v56 = vld [vmem:[#allocation8 + $0x190] sm:$0xff]  ;;  %v732_v57 = vld [vmem:[#allocation8 + $0x1a8] sm:$0xff]  ;;  %v1509_v58 = vpack.c.bf16 %v476_v53, %v473_v52 }
  0x9a   : > { %v479_v59 = vld [vmem:[#allocation6 + $0x1b0] sm:$0xff]  ;;  %v1635_v60 = vpack.c.bf16 %v732_v57, %v729_v56  ;;  %v684_v62 = vld [vmem:[#allocation8 + $0x28] sm:$0xff]  ;;  %v1511_v63 = vpack.c.bf16 %v483_v55, %v480_v54  ;;  %v489_v2 = vld [vmem:[#allocation6 + $0x200] sm:$0xff] }
  0x9b   : > { %v681_v61 = vld [vmem:[#allocation8 + $0x10] sm:$0xff]  ;;  %v482_v0 = vld [vmem:[#allocation6 + $0x1c8] sm:$0xff]  ;;  %v735_v4 = vld [vmem:[#allocation8 + $0x1c0] sm:$0xff] }
  0x9c   : > { %1490 = vmatpush1.bf16.msra.mxu1 %v1489_v25  ;;  %v486_v1 = vld [vmem:[#allocation6 + $0x1e8] sm:$0xff]  ;;  %v1637_v3 = vpack.c.bf16 %v684_v62, %v681_v61  ;;  %1636 = vmatprep.subr.bf16.mxu0 %v1635_v60  ;;  %v738_v5 = vld [vmem:[#allocation8 + $0x1d8] sm:$0xff]  ;;  %v687_v6 = vld [vmem:[#allocation8 + $0x40] sm:$0xff]  ;;  %v1513_v9 = vpack.c.bf16 %v482_v0, %v479_v59 }
  0x9d   : > { %1492 = vmatprep.subr.bf16.mxu1 %v1491_v26  ;;  %v1639_v7 = vpack.c.bf16 %v738_v5, %v735_v4  ;;  %v690_v8 = vld [vmem:[#allocation8 + $0x58] sm:$0xff]  ;;  %v485_v10 = vld [vmem:[#allocation6 + $0x1e0] sm:$0xff]  ;;  %v741_v13 = vld [vmem:[#allocation8 + $0x1f0] sm:$0xff]  ;;  %v1515_v14 = vpack.c.bf16 %v489_v2, %v486_v1 }
  0x9e   : > { %1638 = vmatpush3.bf16.msra.mxu0 %v1637_v3  ;;  %v488_v11 = vld [vmem:[#allocation6 + $0x1f8] sm:$0xff]  ;;  %v1641_v12 = vpack.c.bf16 %v690_v8, %v687_v6  ;;  %v744_v15 = vld [vmem:[#allocation8 + $0x208] sm:$0xff]  ;;  %v693_v16 = vld [vmem:[#allocation8 + $0x70] sm:$0xff] }
  0x9f   : > { %1640 = vmatprep.subr.bf16.mxu0 %v1639_v7  ;;  %v696_v17 = vld [vmem:[#allocation8 + $0x88] sm:$0xff]  ;;  %v492_v18 = vld [vmem:[#allocation6 + $0x218] sm:$0xff]  ;;  %v495_v19 = vld [vmem:[#allocation6 + $0x230] sm:$0xff]  ;;  %v1643_v20 = vpack.c.bf16 %v744_v15, %v741_v13  ;;  %v1517_v24 = vpack.c.bf16 %v488_v11, %v485_v10 }
  0xa0   : > { %1494 = vmatpush1.bf16.msra.mxu1 %v1493_v31  ;;  %v1645_v21 = vpack.c.bf16 %v696_v17, %v693_v16  ;;  %v747_v22 = vld [vmem:[#allocation8 + $0x220] sm:$0xff]  ;;  %v750_v23 = vld [vmem:[#allocation8 + $0x238] sm:$0xff]  ;;  %v1519_v28 = vpack.c.bf16 %v495_v19, %v492_v18  ;;  %v491_v29 = vld [vmem:[#allocation6 + $0x210] sm:$0xff] }
  0xa1   : > { %1496 = vmatprep.subr.bf16.mxu1 %v1495_v32  ;;  %v1647_v25 = vpack.c.bf16 %v750_v23, %v747_v22  ;;  %v699_v26 = vld [vmem:[#allocation8 + $0xa0] sm:$0xff]  ;;  %v702_v27 = vld [vmem:[#allocation8 + $0xb8] sm:$0xff]  ;;  %v494_v30 = vld [vmem:[#allocation6 + $0x228] sm:$0xff] }
  0xa2   : > { %1642 = vmatpush3.bf16.msra.mxu0 %v1641_v12  ;;  %v498_v31 = vld [vmem:[#allocation6 + $0x248] sm:$0xff]  ;;  %v501_v32 = vld [vmem:[#allocation6 + $0x260] sm:$0xff]  ;;  %v753_v33 = vld [vmem:[#allocation8 + $0x250] sm:$0xff]  ;;  %v1649_v35 = vpack.c.bf16 %v702_v27, %v699_v26  ;;  %v1521_v36 = vpack.c.bf16 %v494_v30, %v491_v29 }
  0xa3   : > { %1644 = vmatprep.subr.bf16.mxu0 %v1643_v20  ;;  %v756_v34 = vld [vmem:[#allocation8 + $0x268] sm:$0xff]  ;;  %v705_v39 = vld [vmem:[#allocation8 + $0xd0] sm:$0xff]  ;;  %v1523_v42 = vpack.c.bf16 %v501_v32, %v498_v31  ;;  %v500_v43 = vld [vmem:[#allocation6 + $0x258] sm:$0xff] }
  0xa4   : > { %1498 = vmatpush1.bf16.msra.mxu1 %v1497_v37  ;;  %v497_v37 = vld [vmem:[#allocation6 + $0x240] sm:$0xff]  ;;  %v708_v40 = vld [vmem:[#allocation8 + $0xe8] sm:$0xff]  ;;  %v504_v46 = vld [vmem:[#allocation6 + $0x278] sm:$0xff] }
  0xa5   : > { %1500 = vmatprep.subr.bf16.mxu1 %v1499_v38  ;;  %v1651_v38 = vpack.c.bf16 %v756_v34, %v753_v33  ;;  %v507_v47 = vld [vmem:[#allocation6 + $0x290] sm:$0xff]  ;;  %v1653_v48 = vpack.c.bf16 %v708_v40, %v705_v39  ;;  %v1525_v49 = vpack.c.bf16 %v500_v43, %v497_v37  ;;  %v711_v52 = vld [vmem:[#allocation8 + $0x100] sm:$0xff]  ;;  %v714_v53 = vld [vmem:[#allocation8 + $0x118] sm:$0xff] }
  0xa6   : > { %1646 = vmatpush3.bf16.msra.mxu0 %v1645_v21  ;;  %v1527_v54 = vpack.c.bf16 %v507_v47, %v504_v46  ;;  %v506_v55 = vld [vmem:[#allocation6 + $0x288] sm:$0xff]  ;;  %v765_v56 = vld [vmem:[#allocation8 + $0x2b0] sm:$0xff]  ;;  %v513_v59 = vld [vmem:[#allocation6 + $0x2c0] sm:$0xff]  ;;  %v1657_v60 = vpack.c.bf16 %v714_v53, %v711_v52 }
  0xa7   : > { %1648 = vmatprep.subr.bf16.mxu0 %v1647_v25  ;;  %v768_v57 = vld [vmem:[#allocation8 + $0x2c8] sm:$0xff]  ;;  %v509_v62 = vld [vmem:[#allocation6 + $0x2a0] sm:$0xff]  ;;  %v717_v0 = vld [vmem:[#allocation8 + $0x130] sm:$0xff] }
  0xa8   : > { %1502 = vmatpush1.bf16.msra.mxu1 %v1501_v44  ;;  %v759_v44 = vld [vmem:[#allocation8 + $0x280] sm:$0xff]  ;;  %v720_v1 = vld [vmem:[#allocation8 + $0x148] sm:$0xff]  ;;  %v512_v3 = vld [vmem:[#allocation6 + $0x2b8] sm:$0xff] }
  0xa9   : > { %1504 = vmatprep.subr.bf16.mxu1 %v1503_v45  ;;  %v762_v45 = vld [vmem:[#allocation8 + $0x298] sm:$0xff]  ;;  %v771_v4 = vld [vmem:[#allocation8 + $0x2e0] sm:$0xff]  ;;  %v519_v7 = vld [vmem:[#allocation6 + $0x2f0] sm:$0xff]  ;;  %v1661_v8 = vpack.c.bf16 %v720_v1, %v717_v0 }
  0xaa   : > { %1650 = vmatpush3.bf16.msra.mxu0 %v1649_v35  ;;  %v774_v5 = vld [vmem:[#allocation8 + $0x2f8] sm:$0xff]  ;;  %v723_v11 = vld [vmem:[#allocation8 + $0x160] sm:$0xff]  ;;  %v518_v15 = vld [vmem:[#allocation6 + $0x2e8] sm:$0xff] }
  0xab   : > { %1652 = vmatprep.subr.bf16.mxu0 %v1651_v38  ;;  %v516_v6 = vld [vmem:[#allocation6 + $0x2d8] sm:$0xff]  ;;  %v1663_v10 = vpack.c.bf16 %v774_v5, %v771_v4  ;;  %v475_v16 = vld [vmem:[#allocation6 + $0x190] sm:$0xff]  ;;  %v478_v17 = vld [vmem:[#allocation6 + $0x1a8] sm:$0xff] }
  0xac   : > { %1506 = vmatpush1.bf16.msra.mxu1 %v1505_v50  ;;  %v503_v50 = vld [vmem:[#allocation6 + $0x270] sm:$0xff]  ;;  %v726_v12 = vld [vmem:[#allocation8 + $0x178] sm:$0xff]  ;;  %v1535_v13 = vpack.c.bf16 %v519_v7, %v516_v6  ;;  %v1539_v20 = vpack.c.bf16 %v478_v17, %v475_v16  ;;  %v430_v22 = vld [vmem:[#allocation6 + $0x28] sm:$0xff] }
  0xad   : > { %1508 = vmatprep.subr.bf16.mxu1 %v1507_v51  ;;  %v1655_v51 = vpack.c.bf16 %v762_v45, %v759_v44  ;;  %v1529_v61 = vpack.c.bf16 %v506_v55, %v503_v50  ;;  %v1665_v18 = vpack.c.bf16 %v726_v12, %v723_v11  ;;  %v427_v21 = vld [vmem:[#allocation6 + $0x10] sm:$0xff]  ;;  %v481_v23 = vld [vmem:[#allocation6 + $0x1c0] sm:$0xff]  ;;  %v436_v29 = vld [vmem:[#allocation6 + $0x58] sm:$0xff] }
  0xae   : > { %1654 = vmatpush3.bf16.msra.mxu0 %v1653_v48  ;;  %v2357_v25 = vld [vmem:[%s2337_s12] sm:$0xff]  ;;  %v1541_v26 = vpack.c.bf16 %v430_v22, %v427_v21  ;;  %v490_v31 = vld [vmem:[#allocation6 + $0x208] sm:$0xff]  ;;  %v496_v37 = vld [vmem:[#allocation6 + $0x238] sm:$0xff]  ;;  %s1983_s12 = scalar_lea.vmem %s2395_s16, 256 }
  0xaf   : > { %1656 = vmatprep.subr.bf16.mxu0 %v1655_v51  ;;  %v487_v30 = vld [vmem:[#allocation6 + $0x1f0] sm:$0xff]  ;;  %v442_v35 = vld [vmem:[#allocation6 + $0x88] sm:$0xff]  ;;  %v445_v40 = vld [vmem:[#allocation6 + $0xa0] sm:$0xff]  ;;  %p1984_p13 = scmp.ne.s32.totalorder %s2395_s16, %s1983_s12  ;;  %p1991_p7 = scmp.lt.s32.totalorder %s1989_s11, %s1983_s12 }
  0xb0   : > { %1510 = vmatpush1.bf16.msra.mxu1 %v1509_v58  ;;  %v510_v58 = vld [vmem:[#allocation6 + $0x2a8] sm:$0xff]  ;;  %v1547_v33 = vpack.c.bf16 %v490_v31, %v487_v30  ;;  %v439_v34 = vld [vmem:[#allocation6 + $0x70] sm:$0xff]  ;;  %v508_v50 = vld [vmem:[#allocation6 + $0x298] sm:$0xff] }
  0xb1   : > { %1512 = vmatprep.subr.bf16.mxu1 %v1511_v63  ;;  %v1659_v63 = vpack.c.bf16 %v768_v57, %v765_v56  ;;  %v1531_v2 = vpack.c.bf16 %v513_v59, %v510_v58  ;;  %v1549_v38 = vpack.c.bf16 %v442_v35, %v439_v34  ;;  %v499_v43 = vld [vmem:[#allocation6 + $0x250] sm:$0xff]  ;;  %v502_v44 = vld [vmem:[#allocation6 + $0x268] sm:$0xff]  ;;  %v457_v53 = vld [vmem:[#allocation6 + $0x100] sm:$0xff]  ;;  %p1985_p6 = pnand %p1984_p13, %p2276_p10  ;;  %p1992_p9 = por %p1991_p7, %p1990_p5 }
  0xb2   : > { %1658 = vmatpush3.bf16.msra.mxu0 %v1657_v60  ;;  %v1555_v46 = vpack.c.bf16 %v502_v44, %v499_v43  ;;  %v451_v47 = vld [vmem:[#allocation6 + $0xd0] sm:$0xff]  ;;  %v454_v48 = vld [vmem:[#allocation6 + $0xe8] sm:$0xff]  ;;  %v469_v1 = vld [vmem:[#allocation6 + $0x160] sm:$0xff] }
  0xb3   : > { %1660 = vmatprep.subr.bf16.mxu0 %v1659_v63  ;;  %v1557_v51 = vpack.c.bf16 %v454_v48, %v451_v47  ;;  %v511_v55 = vld [vmem:[#allocation6 + $0x2b0] sm:$0xff]  ;;  %v514_v56 = vld [vmem:[#allocation6 + $0x2c8] sm:$0xff]  ;;  %v683_v4 = vld [vmem:[#allocation8 + $0x20] sm:$0xff]  ;;  %p1986_p3 = pneg %p1985_p6 }
  0xb4   : > { %1514 = vmatpush1.bf16.msra.mxu1 %v1513_v9  ;;  %v1533_v9 = vpack.c.bf16 %v512_v3, %v509_v62  ;;  %v1563_v58 = vpack.c.bf16 %v514_v56, %v511_v55  ;;  %v463_v59 = vld [vmem:[#allocation6 + $0x130] sm:$0xff]  ;;  %v466_v60 = vld [vmem:[#allocation6 + $0x148] sm:$0xff]  ;;  %v520_v62 = vld [vmem:[#allocation6 + $0x2f8] sm:$0xff] }
  0xb5   : > { %1516 = vmatprep.subr.bf16.mxu1 %v1515_v14  ;;  %v515_v14 = vld [vmem:[#allocation6 + $0x2d0] sm:$0xff]  ;;  %v1565_v63 = vpack.c.bf16 %v466_v60, %v463_v59  ;;  %v680_v3 = vld [vmem:[#allocation8 + $0x8] sm:$0xff]  ;;  %v679_v7 = vld [vmem:[#allocation8] sm:$0xff]  ;;  %p1993_p0 = pnand %p1992_p9, %p1986_p3 }
  0xb6   : > { %1662 = vmatpush3.bf16.msra.mxu0 %v1661_v8  ;;  %v1537_v19 = vpack.c.bf16 %v518_v15, %v515_v14  ;;  %v1571_v6 = vpack.c.bf16 %v683_v4, %v680_v3  ;;  %v682_v8 = vld [vmem:[#allocation8 + $0x18] sm:$0xff]  ;;  %v688_v14 = vld [vmem:[#allocation8 + $0x48] sm:$0xff]  ;;  %v695_v16 = vld [vmem:[#allocation8 + $0x80] sm:$0xff] }
  0xb7   : > { %1664 = vmatprep.subr.bf16.mxu0 %v1663_v10  ;;  %v689_v10 = vld [vmem:[#allocation8 + $0x50] sm:$0xff]  ;;  %v1573_v11 = vpack.c.bf16 %v682_v8, %v679_v7  ;;  %v692_v15 = vld [vmem:[#allocation8 + $0x68] sm:$0xff]  ;;  %v698_v21 = vld [vmem:[#allocation8 + $0x98] sm:$0xff] }
  0xb8   : > { %1518 = vmatpush1.bf16.msra.mxu1 %v1517_v24  ;;  %v484_v24 = vld [vmem:[#allocation6 + $0x1d8] sm:$0xff]  ;;  %v701_v22 = vld [vmem:[#allocation8 + $0xb0] sm:$0xff]  ;;  %v715_v44 = vld [vmem:[#allocation8 + $0x120] sm:$0xff] }
  0xb9   : > { %1520 = vmatprep.subr.bf16.mxu1 %v1519_v28  ;;  %v1543_v27 = vpack.c.bf16 %v484_v24, %v481_v23  ;;  %v433_v28 = vld [vmem:[#allocation6 + $0x40] sm:$0xff]  ;;  %v1583_v24 = vpack.c.bf16 %v701_v22, %v698_v21  ;;  %v713_v34 = vld [vmem:[#allocation8 + $0x110] sm:$0xff] }
  0xba   : > { %1666 = vmatpush3.bf16.msra.mxu0 %v1665_v18  ;;  %v1545_v32 = vpack.c.bf16 %v436_v29, %v433_v28  ;;  %v1579_v18 = vpack.c.bf16 %v695_v16, %v692_v15  ;;  %v704_v28 = vld [vmem:[#allocation8 + $0xc8] sm:$0xff]  ;;  %v707_v29 = vld [vmem:[#allocation8 + $0xe0] sm:$0xff]  ;;  %v725_v47 = vld [vmem:[#allocation8 + $0x170] sm:$0xff] }
  0xbb   : > { %v1587_v31 = vpack.c.bf16 %v707_v29, %v704_v28  ;;  %v727_v56 = vld [vmem:[#allocation8 + $0x180] sm:$0xff]  ;;  %v737_v59 = vld [vmem:[#allocation8 + $0x1d0] sm:$0xff] }
  0xbc   : > { %1522 = vmatpush1.bf16.msra.mxu1 %v1521_v36  ;;  %v493_v36 = vld [vmem:[#allocation6 + $0x220] sm:$0xff]  ;;  %v749_v7 = vld [vmem:[#allocation8 + $0x230] sm:$0xff] }
  0xbd   : > { %1524 = vmatprep.subr.bf16.mxu1 %v1523_v42  ;;  %928 = vmatmul.mubr.f32.vlgmr.msra.gmra.mrb[0].mxu0 %v2357_v25  ;;  %v1551_v39 = vpack.c.bf16 %v496_v37, %v493_v36  ;;  %v448_v42 = vld [vmem:[#allocation6 + $0xb8] sm:$0xff]  ;;  %v709_v37 = vld [vmem:[#allocation8 + $0xf0] sm:$0xff]  ;;  %v739_v4 = vld [vmem:[#allocation8 + $0x1e0] sm:$0xff] }
  0xbe   : > { %v1553_v45 = vpack.c.bf16 %v448_v42, %v445_v40  ;;  %v719_v40 = vld [vmem:[#allocation8 + $0x140] sm:$0xff]  ;;  %v757_v22 = vld [vmem:[#allocation8 + $0x270] sm:$0xff] }
  0xbf   : > { %v751_v16 = vld [vmem:[#allocation8 + $0x240] sm:$0xff] }
  0xc0   : > { %1526 = vmatpush1.bf16.msra.mxu1 %v1525_v49  ;;  %v505_v49 = vld [vmem:[#allocation6 + $0x280] sm:$0xff] }
  0xc1   : > { %1528 = vmatprep.subr.bf16.mxu1 %v1527_v54  ;;  %v1559_v52 = vpack.c.bf16 %v508_v50, %v505_v49  ;;  %v460_v54 = vld [vmem:[#allocation6 + $0x118] sm:$0xff]  ;;  %v721_v50 = vld [vmem:[#allocation8 + $0x150] sm:$0xff]  ;;  %v763_v29 = vld [vmem:[#allocation8 + $0x2a0] sm:$0xff] }
  0xc2   : > { %v1561_v57 = vpack.c.bf16 %v460_v54, %v457_v53  ;;  %v731_v53 = vld [vmem:[#allocation8 + $0x1a0] sm:$0xff] }
  0xc4   : > { %1530 = vmatpush1.bf16.msra.mxu1 %v1529_v61  ;;  %v517_v61 = vld [vmem:[#allocation6 + $0x2e0] sm:$0xff] }
  0xc5   : > { %1532 = vmatprep.subr.bf16.mxu1 %v1531_v2  ;;  %v1567_v0 = vpack.c.bf16 %v520_v62, %v517_v61  ;;  %v472_v2 = vld [vmem:[#allocation6 + $0x178] sm:$0xff]  ;;  %v733_v62 = vld [vmem:[#allocation8 + $0x1b0] sm:$0xff] }
  0xc6   : > { %v1569_v5 = vpack.c.bf16 %v472_v2, %v469_v1  ;;  %v743_v1 = vld [vmem:[#allocation8 + $0x200] sm:$0xff] }
  0xc8   : > { %1534 = vmatpush1.bf16.msra.mxu1 %v1533_v9  ;;  %v686_v9 = vld [vmem:[#allocation8 + $0x38] sm:$0xff] }
  0xc9   : > { %1536 = vmatprep.subr.bf16.mxu1 %v1535_v13  ;;  %v1575_v12 = vpack.c.bf16 %v689_v10, %v686_v9  ;;  %v685_v13 = vld [vmem:[#allocation8 + $0x30] sm:$0xff] }
  0xca   : > { %v1577_v17 = vpack.c.bf16 %v688_v14, %v685_v13  ;;  %v745_v10 = vld [vmem:[#allocation8 + $0x210] sm:$0xff]  ;;  %v755_v13 = vld [vmem:[#allocation8 + $0x260] sm:$0xff] }
  0xcc   : > { %1538 = vmatpush1.bf16.msra.mxu1 %v1537_v19  ;;  %v691_v19 = vld [vmem:[#allocation8 + $0x60] sm:$0xff] }
  0xcd   : > { %1540 = vmatprep.subr.bf16.mxu1 %v1539_v20  ;;  %v694_v20 = vld [vmem:[#allocation8 + $0x78] sm:$0xff] }
  0xce   : > { %v1581_v23 = vpack.c.bf16 %v694_v20, %v691_v19  ;;  %v761_v19 = vld [vmem:[#allocation8 + $0x290] sm:$0xff] }
  0xcf   : > { %603 = vmatmul.mubr.f32.vlgmr.msra.gmra.mrb[0].mxu1 %v2357_v25 }
  0xd0   : > { %1542 = vmatpush3.bf16.msra.mxu1 %v1541_v26  ;;  %673 = vmatprep.mubr.f32.mxu1 %v2352_v41  ;;  %v697_v26 = vld [vmem:[#allocation8 + $0x90] sm:$0xff] }
  0xd1   : > { %1544 = vmatprep.subr.bf16.mxu1 %v1543_v27  ;;  %v700_v27 = vld [vmem:[#allocation8 + $0xa8] sm:$0xff] }
  0xd2   : > { %v1585_v30 = vpack.c.bf16 %v700_v27, %v697_v26  ;;  %v767_v26 = vld [vmem:[#allocation8 + $0x2c0] sm:$0xff] }
  0xd4   : > { %1546 = vmatpush3.bf16.msra.mxu1 %v1545_v32  ;;  %v703_v32 = vld [vmem:[#allocation8 + $0xc0] sm:$0xff] }
  0xd5   : > { %1548 = vmatprep.subr.bf16.mxu1 %v1547_v33  ;;  %v710_v33 = vld [vmem:[#allocation8 + $0xf8] sm:$0xff] }
  0xd6   : > { %v1591_v36 = vpack.c.bf16 %v713_v34, %v710_v33  ;;  %v769_v34 = vld [vmem:[#allocation8 + $0x2d0] sm:$0xff] }
  0xd8   : > { %1550 = vmatpush3.bf16.msra.mxu1 %v1549_v38  ;;  %v712_v38 = vld [vmem:[#allocation8 + $0x108] sm:$0xff] }
  0xd9   : > { %1552 = vmatprep.subr.bf16.mxu1 %v1551_v39  ;;  %v716_v39 = vld [vmem:[#allocation8 + $0x128] sm:$0xff]  ;;  %v1593_v42 = vpack.c.bf16 %v712_v38, %v709_v37  ;;  %v968_v38 = vld [vmem:[#allocation9 + $0x18] sm:$0xff] }
  0xda   : > { %v1595_v43 = vpack.c.bf16 %v719_v40, %v716_v39  ;;  %v966_v37 = vld [vmem:[#allocation9 + $0x8] sm:$0xff]  ;;  %v965_v40 = vld [vmem:[#allocation9] sm:$0xff] }
  0xdb   : > { %v1667_v39 = vpack.c.bf16 %v968_v38, %v966_v37  ;;  %v1007_v37 = vld [vmem:[#allocation9 + $0x150] sm:$0xff]  ;;  %v1010_v38 = vld [vmem:[#allocation9 + $0x168] sm:$0xff] }
  0xdc   : > { %1554 = vmatpush3.bf16.msra.mxu1 %v1553_v45  ;;  %v718_v45 = vld [vmem:[#allocation8 + $0x138] sm:$0xff] }
  0xdd   : > { %1556 = vmatprep.subr.bf16.mxu1 %v1555_v46  ;;  %v722_v46 = vld [vmem:[#allocation8 + $0x158] sm:$0xff]  ;;  %v1597_v48 = vpack.c.bf16 %v718_v45, %v715_v44  ;;  %1668 = vmatprep.subr.bf16.mxu0 %v1667_v39  ;;  %v970_v44 = vld [vmem:[#allocation9 + $0x28] sm:$0xff] }
  0xde   : > { %v1599_v49 = vpack.c.bf16 %v725_v47, %v722_v46  ;;  %v972_v45 = vld [vmem:[#allocation9 + $0x38] sm:$0xff]  ;;  %v969_v47 = vld [vmem:[#allocation9 + $0x20] sm:$0xff] }
  0xdf   : > { %v1671_v46 = vpack.c.bf16 %v972_v45, %v970_v44  ;;  %v1012_v39 = vld [vmem:[#allocation9 + $0x178] sm:$0xff]  ;;  %v1011_v44 = vld [vmem:[#allocation9 + $0x170] sm:$0xff]  ;;  %v1014_v45 = vld [vmem:[#allocation9 + $0x188] sm:$0xff] }
  0xe0   : > { %1558 = vmatpush3.bf16.msra.mxu1 %v1557_v51  ;;  %v724_v51 = vld [vmem:[#allocation8 + $0x168] sm:$0xff] }
  0xe1   : > { %1560 = vmatprep.subr.bf16.mxu1 %v1559_v52  ;;  %v728_v52 = vld [vmem:[#allocation8 + $0x188] sm:$0xff]  ;;  %v1601_v54 = vpack.c.bf16 %v724_v51, %v721_v50  ;;  %v976_v51 = vld [vmem:[#allocation9 + $0x58] sm:$0xff] }
  0xe2   : > { %v1603_v55 = vpack.c.bf16 %v731_v53, %v728_v52  ;;  %v973_v52 = vld [vmem:[#allocation9 + $0x40] sm:$0xff]  ;;  %v975_v53 = vld [vmem:[#allocation9 + $0x50] sm:$0xff] }
  0xe4   : > { %1562 = vmatpush3.bf16.msra.mxu1 %v1561_v57  ;;  %v730_v57 = vld [vmem:[#allocation8 + $0x198] sm:$0xff] }
  0xe5   : > { %1564 = vmatprep.subr.bf16.mxu1 %v1563_v58  ;;  %v734_v58 = vld [vmem:[#allocation8 + $0x1b8] sm:$0xff]  ;;  %v1605_v60 = vpack.c.bf16 %v730_v57, %v727_v56  ;;  %v1677_v56 = vpack.c.bf16 %v975_v53, %v973_v52 }
  0xe6   : > { %v1607_v61 = vpack.c.bf16 %v737_v59, %v734_v58  ;;  %v977_v58 = vld [vmem:[#allocation9 + $0x60] sm:$0xff]  ;;  %v979_v59 = vld [vmem:[#allocation9 + $0x70] sm:$0xff]  ;;  %v1020_v52 = vld [vmem:[#allocation9 + $0x1b8] sm:$0xff] }
  0xe8   : > { %1566 = vmatpush3.bf16.msra.mxu1 %v1565_v63  ;;  %v736_v63 = vld [vmem:[#allocation8 + $0x1c8] sm:$0xff] }
  0xe9   : > { %1568 = vmatprep.subr.bf16.mxu1 %v1567_v0  ;;  %v740_v0 = vld [vmem:[#allocation8 + $0x1e8] sm:$0xff]  ;;  %v1609_v2 = vpack.c.bf16 %v736_v63, %v733_v62  ;;  %v1681_v62 = vpack.c.bf16 %v979_v59, %v977_v58 }
  0xea   : > { %v1611_v3 = vpack.c.bf16 %v743_v1, %v740_v0  ;;  %v981_v0 = vld [vmem:[#allocation9 + $0x80] sm:$0xff]  ;;  %v983_v1 = vld [vmem:[#allocation9 + $0x90] sm:$0xff] }
  0xec   : > { %1570 = vmatpush3.bf16.msra.mxu1 %v1569_v5  ;;  %v742_v5 = vld [vmem:[#allocation8 + $0x1f8] sm:$0xff] }
  0xed   : > { %1572 = vmatprep.subr.bf16.mxu1 %v1571_v6  ;;  %v746_v6 = vld [vmem:[#allocation8 + $0x218] sm:$0xff]  ;;  %v1613_v8 = vpack.c.bf16 %v742_v5, %v739_v4 }
  0xee   : > { %v1615_v9 = vpack.c.bf16 %v749_v7, %v746_v6  ;;  %v988_v4 = vld [vmem:[#allocation9 + $0xb8] sm:$0xff]  ;;  %v985_v6 = vld [vmem:[#allocation9 + $0xa0] sm:$0xff]  ;;  %v987_v7 = vld [vmem:[#allocation9 + $0xb0] sm:$0xff] }
  0xef   : > { %674 = vmatmul.mubr.f32.vlgmr.msra.gmra.mrb[2].mxu1 %v2357_v25 }
  0xf0   : > { %1574 = vmatpush1.bf16.msra.mxu1 %v1573_v11  ;;  %856 = vmatprep.mubr.f32.mxu1 %v2352_v41  ;;  %v706_v41 = vld [vmem:[#allocation8 + $0xd8] sm:$0xff]  ;;  %v748_v11 = vld [vmem:[#allocation8 + $0x228] sm:$0xff] }
  0xf1   : > { %1576 = vmatprep.subr.bf16.mxu1 %v1575_v12  ;;  %v1589_v35 = vpack.c.bf16 %v706_v41, %v703_v32  ;;  %v752_v12 = vld [vmem:[#allocation8 + $0x248] sm:$0xff]  ;;  %v1617_v14 = vpack.c.bf16 %v748_v11, %v745_v10  ;;  %v773_v32 = vld [vmem:[#allocation8 + $0x2f0] sm:$0xff]  ;;  %v992_v10 = vld [vmem:[#allocation9 + $0xd8] sm:$0xff] }
  0xf2   : > { %v1619_v15 = vpack.c.bf16 %v755_v13, %v752_v12  ;;  %v989_v12 = vld [vmem:[#allocation9 + $0xc0] sm:$0xff]  ;;  %v991_v13 = vld [vmem:[#allocation9 + $0xd0] sm:$0xff] }
  0xf4   : > { %1578 = vmatpush1.bf16.msra.mxu1 %v1577_v17  ;;  %v754_v17 = vld [vmem:[#allocation8 + $0x258] sm:$0xff] }
  0xf5   : > { %1580 = vmatprep.subr.bf16.mxu1 %v1579_v18  ;;  %v758_v18 = vld [vmem:[#allocation8 + $0x278] sm:$0xff]  ;;  %v1621_v20 = vpack.c.bf16 %v754_v17, %v751_v16  ;;  %v993_v17 = vld [vmem:[#allocation9 + $0xe0] sm:$0xff] }
  0xf6   : > { %v1623_v21 = vpack.c.bf16 %v761_v19, %v758_v18  ;;  %v996_v16 = vld [vmem:[#allocation9 + $0xf8] sm:$0xff]  ;;  %v995_v19 = vld [vmem:[#allocation9 + $0xf0] sm:$0xff] }
  0xf8   : > { %1582 = vmatpush1.bf16.msra.mxu1 %v1581_v23  ;;  %v760_v23 = vld [vmem:[#allocation8 + $0x288] sm:$0xff] }
  0xf9   : > { %1584 = vmatprep.subr.bf16.mxu1 %v1583_v24  ;;  %v764_v24 = vld [vmem:[#allocation8 + $0x2a8] sm:$0xff]  ;;  %v1625_v27 = vpack.c.bf16 %v760_v23, %v757_v22  ;;  %v1697_v22 = vpack.c.bf16 %v995_v19, %v993_v17 }
  0xfa   : > { %v1627_v28 = vpack.c.bf16 %v767_v26, %v764_v24  ;;  %v997_v24 = vld [vmem:[#allocation9 + $0x100] sm:$0xff]  ;;  %v999_v26 = vld [vmem:[#allocation9 + $0x110] sm:$0xff] }
  0xfc   : > { %1586 = vmatpush1.bf16.msra.mxu1 %v1585_v30  ;;  %v766_v30 = vld [vmem:[#allocation8 + $0x2b8] sm:$0xff] }
  0xfd   : > { %1588 = vmatprep.subr.bf16.mxu1 %v1587_v31  ;;  %v770_v31 = vld [vmem:[#allocation8 + $0x2d8] sm:$0xff]  ;;  %v1629_v41 = vpack.c.bf16 %v766_v30, %v763_v29  ;;  %v1701_v29 = vpack.c.bf16 %v999_v26, %v997_v24 }
  0xfe   : > { %v1631_v33 = vpack.c.bf16 %v773_v32, %v770_v31  ;;  %v1001_v31 = vld [vmem:[#allocation9 + $0x120] sm:$0xff]  ;;  %v1003_v32 = vld [vmem:[#allocation9 + $0x130] sm:$0xff] }
 0x100   : > { %1590 = vmatpush1.bf16.msra.mxu1 %v1589_v35  ;;  %v772_v35 = vld [vmem:[#allocation8 + $0x2e8] sm:$0xff] }
 0x101   : > { %1592 = vmatprep.subr.bf16.mxu1 %v1591_v36  ;;  %v1633_v36 = vpack.c.bf16 %v772_v35, %v769_v34  ;;  %v1705_v34 = vpack.c.bf16 %v1003_v32, %v1001_v31  ;;  %v775_v31 = vld [vmem:[%s2446_s4] sm:$0x7] }
 0x104   : > { %1594 = vmatpush1.bf16.msra.mxu1 %v1593_v42  ;;  %v967_v42 = vld [vmem:[#allocation9 + $0x10] sm:$0xff] }
 0x105   : > { %1596 = vmatprep.subr.bf16.mxu1 %v1595_v43  ;;  %v1669_v43 = vpack.c.bf16 %v967_v42, %v965_v40  ;;  %v1711_v42 = vpack.c.bf16 %v1012_v39, %v1010_v38 }
 0x107   : > { %1670 = vmatpush1.bf16.msra.mxu0 %v1669_v43  ;;  %v1009_v43 = vld [vmem:[#allocation9 + $0x160] sm:$0xff] }
 0x108   : > { %1598 = vmatpush1.bf16.msra.mxu1 %v1597_v48  ;;  %v971_v48 = vld [vmem:[#allocation9 + $0x30] sm:$0xff]  ;;  %1672 = vmatprep.subr.bf16.mxu0 %v1671_v46  ;;  %v1016_v46 = vld [vmem:[#allocation9 + $0x198] sm:$0xff] }
 0x109   : > { %1600 = vmatprep.subr.bf16.mxu1 %v1599_v49  ;;  %v974_v49 = vld [vmem:[#allocation9 + $0x48] sm:$0xff]  ;;  %v1673_v50 = vpack.c.bf16 %v971_v48, %v969_v47  ;;  %v1713_v47 = vpack.c.bf16 %v1011_v44, %v1009_v43  ;;  %v1715_v48 = vpack.c.bf16 %v1016_v46, %v1014_v45 }
 0x10b   : > { %1674 = vmatpush1.bf16.msra.mxu0 %v1673_v50  ;;  %v1015_v50 = vld [vmem:[#allocation9 + $0x190] sm:$0xff] }
 0x10c   : > { %1602 = vmatpush1.bf16.msra.mxu1 %v1601_v54  ;;  %v978_v54 = vld [vmem:[#allocation9 + $0x68] sm:$0xff] }
 0x10d   : > { %1604 = vmatprep.subr.bf16.mxu1 %v1603_v55  ;;  %v980_v55 = vld [vmem:[#allocation9 + $0x78] sm:$0xff] }
 0x10e   : > { %v1679_v57 = vpack.c.bf16 %v980_v55, %v978_v54  ;;  %v1017_v54 = vld [vmem:[#allocation9 + $0x1a0] sm:$0xff]  ;;  %v1019_v55 = vld [vmem:[#allocation9 + $0x1b0] sm:$0xff] }
 0x10f   : > { %v1721_v58 = vpack.c.bf16 %v1019_v55, %v1017_v54 }
 0x110   : > { %1606 = vmatpush1.bf16.msra.mxu1 %v1605_v60  ;;  %v982_v60 = vld [vmem:[#allocation9 + $0x88] sm:$0xff] }
 0x111   : > { %1608 = vmatprep.subr.bf16.mxu1 %v1607_v61  ;;  %v984_v61 = vld [vmem:[#allocation9 + $0x98] sm:$0xff] }
 0x112   : > { %v1683_v63 = vpack.c.bf16 %v984_v61, %v982_v60  ;;  %v1021_v60 = vld [vmem:[#allocation9 + $0x1c0] sm:$0xff]  ;;  %v1023_v61 = vld [vmem:[#allocation9 + $0x1d0] sm:$0xff] }
 0x114   : > { %1610 = vmatpush1.bf16.msra.mxu1 %v1609_v2  ;;  %v1685_v2 = vpack.c.bf16 %v983_v1, %v981_v0  ;;  %v1028_v0 = vld [vmem:[#allocation9 + $0x1f8] sm:$0xff] }
 0x115   : > { %1612 = vmatprep.subr.bf16.mxu1 %v1611_v3  ;;  %v986_v3 = vld [vmem:[#allocation9 + $0xa8] sm:$0xff] }
 0x116   : > { %v1687_v5 = vpack.c.bf16 %v988_v4, %v986_v3  ;;  %v1027_v3 = vld [vmem:[#allocation9 + $0x1f0] sm:$0xff] }
 0x118   : > { %1614 = vmatpush1.bf16.msra.mxu1 %v1613_v8  ;;  %v1689_v8 = vpack.c.bf16 %v987_v7, %v985_v6  ;;  %v1032_v6 = vld [vmem:[#allocation9 + $0x218] sm:$0xff] }
 0x119   : > { %1616 = vmatprep.subr.bf16.mxu1 %v1615_v9  ;;  %v990_v9 = vld [vmem:[#allocation9 + $0xc8] sm:$0xff] }
 0x11a   : > { %v1691_v11 = vpack.c.bf16 %v992_v10, %v990_v9 }
 0x11c   : > { %1618 = vmatpush1.bf16.msra.mxu1 %v1617_v14  ;;  %v1693_v14 = vpack.c.bf16 %v991_v13, %v989_v12  ;;  %v523_v13 = vlaneseq }
 0x11d   : > { %1620 = vmatprep.subr.bf16.mxu1 %v1619_v15  ;;  %v994_v15 = vld [vmem:[#allocation9 + $0xe8] sm:$0xff] }
 0x11e   : > { %v1695_v18 = vpack.c.bf16 %v996_v16, %v994_v15  ;;  %v521_v16 = vld [vmem:[%s2444_s2] sm:$0x7] }
 0x120   : > { %1622 = vmatpush1.bf16.msra.mxu1 %v1621_v20  ;;  %v998_v20 = vld [vmem:[#allocation9 + $0x108] sm:$0xff] }
 0x121   : > { %1624 = vmatprep.subr.bf16.mxu1 %v1623_v21  ;;  %v1000_v21 = vld [vmem:[#allocation9 + $0x118] sm:$0xff] }
 0x122   : > { %v1699_v23 = vpack.c.bf16 %v1000_v21, %v998_v20 }
 0x124   : > { %1626 = vmatpush1.bf16.msra.mxu1 %v1625_v27  ;;  %v1002_v27 = vld [vmem:[#allocation9 + $0x128] sm:$0xff] }
 0x125   : > { %1628 = vmatprep.subr.bf16.mxu1 %v1627_v28  ;;  %v1004_v28 = vld [vmem:[#allocation9 + $0x138] sm:$0xff] }
 0x126   : > { %v1703_v30 = vpack.c.bf16 %v1004_v28, %v1002_v27 }
 0x128   : > { %1630 = vmatpush1.bf16.msra.mxu1 %v1629_v41  ;;  %v1006_v41 = vld [vmem:[#allocation9 + $0x148] sm:$0xff] }
 0x129   : > { %1632 = vmatprep.subr.bf16.mxu1 %v1631_v33  ;;  %v1008_v33 = vld [vmem:[#allocation9 + $0x158] sm:$0xff] }
 0x12a   : > { %v1707_v35 = vpack.c.bf16 %v1008_v33, %v1006_v41 }
 0x12c   : > { %1634 = vmatpush1.bf16.msra.mxu1 %v1633_v36  ;;  %v1005_v36 = vld [vmem:[#allocation9 + $0x140] sm:$0xff] }
 0x12d   : > { %v1709_v40 = vpack.c.bf16 %v1007_v37, %v1005_v36 }
 0x12f   : > { %857 = vmatmul.mubr.f32.vlgmr.msra.gmra.mrb[4].mxu1 %v2357_v25  ;;  %v1675_v25 = vpack.c.bf16 %v976_v51, %v974_v49  ;;  %v1013_v49 = vld [vmem:[#allocation9 + $0x180] sm:$0xff]  ;;  %v1018_v51 = vld [vmem:[#allocation9 + $0x1a8] sm:$0xff] }
 0x130   : > { %v1717_v53 = vpack.c.bf16 %v1015_v50, %v1013_v49 }
 0x131   : > { %1676 = vmatprep.subr.bf16.mxu0 %v1675_v25  ;;  %v1719_v25 = vpack.c.bf16 %v1020_v52, %v1018_v51 }
 0x132   : > { %1678 = vmatpush1.bf16.msra.mxu0 %v1677_v56  ;;  %v1022_v56 = vld [vmem:[#allocation9 + $0x1c8] sm:$0xff] }
 0x133   : > { %1680 = vmatprep.subr.bf16.mxu0 %v1679_v57  ;;  %v1024_v57 = vld [vmem:[#allocation9 + $0x1d8] sm:$0xff] }
 0x134   : > { %v1723_v59 = vpack.c.bf16 %v1024_v57, %v1022_v56 }
 0x136   : > { %1682 = vmatpush1.bf16.msra.mxu0 %v1681_v62  ;;  %v1725_v62 = vpack.c.bf16 %v1023_v61, %v1021_v60 }
 0x137   : > { %1684 = vmatprep.subr.bf16.mxu0 %v1683_v63  ;;  %v1026_v63 = vld [vmem:[#allocation9 + $0x1e8] sm:$0xff] }
 0x138   : > { %v1727_v1 = vpack.c.bf16 %v1028_v0, %v1026_v63  ;;  %v1029_v63 = vld [vmem:[#allocation9 + $0x200] sm:$0xff]  ;;  %v1031_v0 = vld [vmem:[#allocation9 + $0x210] sm:$0xff] }
 0x13a   : > { %1686 = vmatpush1.bf16.msra.mxu0 %v1685_v2  ;;  %v1025_v2 = vld [vmem:[#allocation9 + $0x1e0] sm:$0xff] }
 0x13b   : > { %1688 = vmatprep.subr.bf16.mxu0 %v1687_v5  ;;  %v1729_v4 = vpack.c.bf16 %v1027_v3, %v1025_v2  ;;  %v1030_v5 = vld [vmem:[#allocation9 + $0x208] sm:$0xff] }
 0x13c   : > { %v1731_v7 = vpack.c.bf16 %v1032_v6, %v1030_v5  ;;  %v1034_v3 = vld [vmem:[#allocation9 + $0x228] sm:$0xff] }
 0x13e   : > { %1690 = vmatpush1.bf16.msra.mxu0 %v1689_v8 }
 0x13f   : > { %1692 = vmatprep.subr.bf16.mxu0 %v1691_v11 }
 0x142   : > { %1694 = vmatpush1.bf16.msra.mxu0 %v1693_v14  ;;  %v524_v14 = vshrl.u32 %v523_v13, 7 }
 0x143   : > { %1696 = vmatprep.subr.bf16.mxu0 %v1695_v18 }
 0x144   : > { %v533_v15 = vsub.s32 2, %v524_v14  ;;  %v2368_v28 = vsub.s32 0, %v524_v14 }
 0x146   : > { %1698 = vmatpush1.bf16.msra.mxu0 %v1697_v22  ;;  %v534_v18 = vrot.slane %v521_v16, %v533_v15  ;;  %v788_v41 = vrot.slane %v775_v31, %v533_v15 }
 0x147   : > { %1700 = vmatprep.subr.bf16.mxu0 %v1699_v23 }
 0x14a   : > { %1702 = vmatpush1.bf16.msra.mxu0 %v1701_v29  ;;  %v2370_v29 = vsub.s32 1, %v524_v14  ;;  %v2083_v14 = vmov 0.0  }
 0x14b   : > { %1704 = vmatprep.subr.bf16.mxu0 %v1703_v30  ;;  %v526_v30 = vrot.slane %v521_v16, %v2368_v28 }
 0x14c   : > { %v530_v32 = vrot.slane %v521_v16, %v2370_v29  ;;  %v784_v55 = vrot.slane %v775_v31, %v2370_v29  ;;  %v1037_v16 = vld [vmem:[#allocation9 + $0x240] sm:$0xff] }
 0x14e   : > { %1706 = vmatpush1.bf16.msra.mxu0 %v1705_v34 }
 0x14f   : > { %1708 = vmatprep.subr.bf16.mxu0 %v1707_v35 }
 0x152   : > { %1710 = vmatpush1.bf16.msra.mxu0 %v1709_v40 }
 0x153   : > { %1712 = vmatprep.subr.bf16.mxu0 %v1711_v42 }
 0x156   : > { %1714 = vmatpush1.bf16.msra.mxu0 %v1713_v47 }
 0x157   : > { %1716 = vmatprep.subr.bf16.mxu0 %v1715_v48 }
 0x15a   : > { %1718 = vmatpush1.bf16.msra.mxu0 %v1717_v53 }
 0x15b   : > { %1720 = vmatprep.subr.bf16.mxu0 %v1719_v25  ;;  %v780_v25 = vrot.slane %v775_v31, %v2368_v28  ;;  %v1045_v31 = vld [vmem:[#allocation9 + $0x280] sm:$0xff] }
 0x15e   : > { %1722 = vmatpush1.bf16.msra.mxu0 %v1721_v58 }
 0x15f   : > { %1724 = vmatprep.subr.bf16.mxu0 %v1723_v59 }
 0x162   : > { %1726 = vmatpush1.bf16.msra.mxu0 %v1725_v62 }
 0x163   : > { %1728 = vmatprep.subr.bf16.mxu0 %v1727_v1 }
 0x166   : > { %1730 = vmatpush1.bf16.msra.mxu0 %v1729_v4  ;;  %v1036_v4 = vld [vmem:[#allocation9 + $0x238] sm:$0xff] }
 0x167   : > { %1732 = vmatprep.subr.bf16.mxu0 %v1731_v7  ;;  %v1733_v7 = vpack.c.bf16 %v1031_v0, %v1029_v63 }
 0x190   : > { %v1472_v8 = vpop.f32.mrb[0].mxu0 }
 0x191   : > { %v1473_v10 = vpop.f32.mrb[1].mxu0 }
 0x192   : > { %v1474_v12 = vadd.f32 %v1473_v10, %v1472_v8  ;;  %v1735_v8 = vpack.c.bf16 %v1036_v4, %v1034_v3  ;;  %v1035_v10 = vld [vmem:[#allocation9 + $0x230] sm:$0xff] }
 0x194   : > { %v930_v36 = vadd.f32 %v1474_v12, %v788_v41  ;;  %v1040_v12 = vld [vmem:[#allocation9 + $0x258] sm:$0xff]  ;;  %v1050_v41 = vld [vmem:[#allocation9 + $0x2a8] sm:$0xff] }
 0x1a2   : > { %v604_v9 = vpop.f32.mrb[0].mxu1 }
 0x1a3   : > { %v606_v11 = vpop.f32.mrb[1].mxu1  ;;  %v605_v33 = vadd.f32 %v604_v9, %v526_v30  ;;  %v1033_v9 = vld [vmem:[#allocation9 + $0x220] sm:$0xff] }
 0x1a4   : > { %v607_v34 = vadd.f32 %v606_v11, %v530_v32  ;;  %v1038_v11 = vld [vmem:[#allocation9 + $0x248] sm:$0xff]  ;;  %v1737_v13 = vpack.c.bf16 %v1035_v10, %v1033_v9  ;;  %v1047_v32 = vld [vmem:[#allocation9 + $0x290] sm:$0xff] }
 0x1a5   : > { %v936_v39 = vmul.f32 0.044715, %v605_v33  ;;  %v933_v57 = vmul.f32 0.5, %v605_v33  ;;  %v1739_v15 = vpack.c.bf16 %v1040_v12, %v1038_v11 }
 0x1a6   : > { %v937_v40 = vmul.f32 0.044715, %v607_v34  ;;  %v934_v59 = vmul.f32 0.5, %v607_v34 }
 0x1a7   : > { %v939_v44 = vmul.f32 %v936_v39, %v605_v33  ;;  %v1056_v39 = vld [vmem:[#allocation9 + $0x2d8] sm:$0xff] }
 0x1a8   : > { %v940_v45 = vmul.f32 %v937_v40, %v607_v34 }
 0x1a9   : > { %v942_v46 = vmul.f32 %v939_v44, %v605_v33  ;;  %v1053_v44 = vld [vmem:[#allocation9 + $0x2c0] sm:$0xff] }
 0x1aa   : > { %v943_v47 = vmul.f32 %v940_v45, %v607_v34  ;;  %v1055_v45 = vld [vmem:[#allocation9 + $0x2d0] sm:$0xff] }
 0x1ab   : > { %v945_v48 = vadd.f32 %v942_v46, %v605_v33  ;;  %v1052_v33 = vld [vmem:[#allocation9 + $0x2b8] sm:$0xff]  ;;  %v1058_v46 = vld [vmem:[#allocation9 + $0x2e8] sm:$0xff] }
 0x1ac   : > { %v946_v49 = vadd.f32 %v943_v47, %v607_v34  ;;  %v1749_v34 = vpack.c.bf16 %v1047_v32, %v1045_v31  ;;  %v1060_v47 = vld [vmem:[#allocation9 + $0x2f8] sm:$0xff] }
 0x1ad   : > { %v948_v50 = vmul.f32 0.7978846, %v945_v48  ;;  %v1757_v48 = vpack.c.bf16 %v1055_v45, %v1053_v44 }
 0x1ae   : > { %v949_v51 = vmul.f32 0.7978846, %v946_v49  ;;  %v1759_v49 = vpack.c.bf16 %v1060_v47, %v1058_v46 }
 0x1c2   : > { %v1437_v17 = vpop.f32.mrb[2].mxu1 }
 0x1c3   : > { %v1438_v19 = vpop.f32.mrb[3].mxu1 }
 0x1c4   : > { %v1439_v20 = vadd.f32 %v1438_v19, %v1437_v17  ;;  %v1039_v17 = vld [vmem:[#allocation9 + $0x250] sm:$0xff]  ;;  %v1044_v19 = vld [vmem:[#allocation9 + $0x278] sm:$0xff] }
 0x1c6   : > { %v676_v21 = vadd.f32 %v1439_v20, %v534_v18  ;;  %v1042_v18 = vld [vmem:[#allocation9 + $0x268] sm:$0xff]  ;;  %v1741_v20 = vpack.c.bf16 %v1039_v17, %v1037_v16 }
 0x1c8   : > { %v938_v22 = vmul.f32 0.044715, %v676_v21  ;;  %v935_v37 = vmul.f32 0.5, %v676_v21 }
 0x1ca   : > { %v941_v23 = vmul.f32 %v938_v22, %v676_v21  ;;  %v1041_v22 = vld [vmem:[#allocation9 + $0x260] sm:$0xff] }
 0x1cc   : > { %v944_v24 = vmul.f32 %v941_v23, %v676_v21  ;;  %v1043_v23 = vld [vmem:[#allocation9 + $0x270] sm:$0xff] }
 0x1ce   : > { %v947_v26 = vadd.f32 %v944_v24, %v676_v21  ;;  %v1743_v21 = vpack.c.bf16 %v1044_v19, %v1042_v18  ;;  %v1046_v24 = vld [vmem:[#allocation9 + $0x288] sm:$0xff] }
 0x1d0   : > { %v950_v27 = vmul.f32 0.7978846, %v947_v26  ;;  %v1048_v26 = vld [vmem:[#allocation9 + $0x298] sm:$0xff] }
 0x1d1   : > { %v1747_v30 = vpack.c.bf16 %v1048_v26, %v1046_v24 }
 0x1d2   : > { %1863 = vtanh.f32 %v950_v27  ;;  %v1745_v27 = vpack.c.bf16 %v1043_v23, %v1041_v22 }
 0x1d3   : > { %1865 = vtanh.f32 %v948_v50  ;;  %v1057_v50 = vld [vmem:[#allocation9 + $0x2e0] sm:$0xff] }
 0x1d4   : > { %1867 = vtanh.f32 %v949_v51  ;;  %v1059_v51 = vld [vmem:[#allocation9 + $0x2f0] sm:$0xff] }
 0x1dc   : > { %v1864_v35 = vpop.eup %1863 }
 0x1dd   : > { %v956_v38 = vadd.f32 1.0, %v1864_v35  ;;  %v1866_v52 = vpop.eup %1865  ;;  %v1751_v35 = vpack.c.bf16 %v1052_v33, %v1050_v41 }
 0x1de   : > { %v1868_v53 = vpop.eup %1867  ;;  %v954_v54 = vadd.f32 1.0, %v1866_v52  ;;  %v1761_v52 = vpack.c.bf16 %v1059_v51, %v1057_v50 }
 0x1df   : > { %v959_v42 = vmul.f32 %v956_v38, %v935_v37  ;;  %v955_v56 = vadd.f32 1.0, %v1868_v53  ;;  %v1051_v37 = vld [vmem:[#allocation9 + $0x2b0] sm:$0xff]  ;;  %v1054_v38 = vld [vmem:[#allocation9 + $0x2c8] sm:$0xff]  ;;  %v1212_v53 = vld [vmem:[%s2474_s14] sm:$0x3] }
 0x1e0   : > { %v957_v61 = vmul.f32 %v954_v54, %v933_v57  ;;  %v1221_v54 = vrot.slane %v1212_v53, %v2370_v29 }
 0x1e1   : > { %v2377_v43 = vmul.f32 %v959_v42, %v930_v36  ;;  %v958_v2 = vmul.f32 %v955_v56, %v934_v59  ;;  %v1049_v36 = vld [vmem:[#allocation9 + $0x2a0] sm:$0xff]  ;;  %v1755_v42 = vpack.c.bf16 %v1056_v39, %v1054_v38 }
 0x1e2   : > { %v1753_v40 = vpack.c.bf16 %v1051_v37, %v1049_v36 }
 0x202   : > { %v858_v58 = vpop.f32.mrb[4].mxu1 }
 0x203   : > { %v859_v60 = vadd.f32 %v858_v58, %v780_v25  ;;  %v860_v62 = vpop.f32.mrb[5].mxu1  ;;  %v1217_v25 = vrot.slane %v1212_v53, %v2368_v28 }
 0x204   : > { %v861_v1 = vadd.f32 %v860_v62, %v784_v55 }
 0x205   : > { %v960_v5 = vmul.f32 %v957_v61, %v859_v60 }
 0x206   : > { %v961_v6 = vmul.f32 %v958_v2, %v861_v1 }
 0x208   : > { %1125 = vmatprep.mubr.f32.mxu0 %v961_v6 }
 0x209   : > { %1126 = vmatmul.mubr.f32.vlgmr.msra.gmra.mrb[2].mxu0 %v960_v5 }
 0x20a   : > { %1734 = vmatpush1.bf16.msra.mxu0 %v1733_v7  ;;  %1196 = vmatprep.mubr.f32.mxu0 %v2083_v14 }
 0x20b   : > { %1736 = vmatprep.subr.bf16.mxu0 %v1735_v8 }
 0x20e   : > { %1738 = vmatpush1.bf16.msra.mxu0 %v1737_v13 }
 0x20f   : > { %1740 = vmatprep.subr.bf16.mxu0 %v1739_v15 }
 0x212   : > { %1742 = vmatpush1.bf16.msra.mxu0 %v1741_v20 }
 0x213   : > { %1744 = vmatprep.subr.bf16.mxu0 %v1743_v21 }
 0x216   : > { %1746 = vmatpush1.bf16.msra.mxu0 %v1745_v27 }
 0x217   : > { %1748 = vmatprep.subr.bf16.mxu0 %v1747_v30 }
 0x21a   : > { %1750 = vmatpush1.bf16.msra.mxu0 %v1749_v34 }
 0x21b   : > { %1752 = vmatprep.subr.bf16.mxu0 %v1751_v35 }
 0x21e   : > { %1754 = vmatpush1.bf16.msra.mxu0 %v1753_v40 }
 0x21f   : > { %1756 = vmatprep.subr.bf16.mxu0 %v1755_v42 }
 0x222   : > { %1758 = vmatpush1.bf16.msra.mxu0 %v1757_v48 }
 0x223   : > { %1760 = vmatprep.subr.bf16.mxu0 %v1759_v49 }
 0x226   : > { %1762 = vmatpush1.bf16.msra.mxu0 %v1761_v52 }
 0x229   : > { %1197 = vmatmul.mubr.f32.vlgmr.msra.gmra.mrb[2].mxu0 %v2377_v43 }
 0x2fc   : > { %v1198_v55 = vpop.f32.mrb[2].mxu0 }
 0x2fd   : > { %v1224_v56 = vadd.f32 %v1217_v25, %v1198_v55  ;;  %v1200_v57 = vpop.f32.mrb[3].mxu0 }
 0x2fe   : > { %v1225_v58 = vadd.f32 %v1221_v54, %v1200_v57 }
 0x2ff   : > { %1226 = vst [vmem:[%s403_s30] sm:$0xff] %v1224_v56 }
 0x300   : > { %1227 = vst [vmem:[%s403_s30 + $0x8] sm:$0xff] %v1225_v58 }
 0x301   : > { %1996 = shalt.err (!%p1993_p0)
}
 0x302   : > { %s1997_s22 = scalar_lea.hbm %s2393_s6, 256  ;;  %s2001_s15 = scalar_lea.hbm %s2475_s21, 512 }
 0x303   : > { %p1998_p4 = scmp.ne.s32.totalorder %s2393_s6, %s1997_s22  ;;  %p2002_p1 = scmp.lt.u32.totalorder %s2393_s6, %s2475_s21 }
 0x304   : > { %p2003_p12 = scmp.lt.u32.totalorder %s2001_s15, %s1997_s22  ;;  %p2005_p13 = scmp.lt.u32.totalorder %s1997_s22, %s2393_s6 }
 0x305   : > { %p1999_p2 = pnand %p1998_p4, %p2276_p10 }
 0x306   : > { %p2004_p11 = por %p2003_p12, %p2002_p1 }
 0x307   : > { %p2000_p8 = pneg %p1999_p2 }
 0x308   : > { %p2006_p6 = por %p2005_p13, %p2004_p11 }
 0x30a   : > { %p2007_p3 = pnand %p2006_p6, %p2000_p8 }
 0x30c   : > { %2010 = shalt.err (!%p2007_p3)
}
 0x30d   : > { %1779 = dma.vmem_to_hbm [thread:$0]  (%p2276_p10), %s2395_s16, 256, %s2393_s6, %s1229_s27  }
 0x30e PF: > { %s2476_s20 = sld [smem:[#allocation16_spill]]  ;;  %s2477_s30 = sld [smem:[#allocation17_spill]] }
 0x30f   : > { %p2479_p7 = scmp.ge.s32.totalorder %s2073_s29, 2 }
 0x314   : > { %s1255_s17 = sand.u32 1, %s2476_s20   ;;  %p2478_p5 = scmp.ne.s32.totalorder %s2477_s30, 0 }
 0x315   : > { %s1256_s19 = scalar_lea.sflag [#allocation5], %s1255_s17 }
 0x316   : > { %p1796_p9 = pnand %p2479_p7, %p2478_p5 }
 0x318   : > { %2048 = dma.done.wait (!%p1796_p9), %s1256_s19, 256  }
 0x319   : > { %2050 = vsyncadd (!%p1796_p9), %s1256_s19, 4294967040  ;;  %s25_s29 = sadd.s32 1, %s2073_s29   ;;  %s2480_s24 = smov %s2057_s25 }
 0x31a   : > { %p22_p0 = scmp.ge.s32.totalorder %s25_s29, 4   ;;  %s2481_s25 = smov %s2061_s26 }
 0x31b   : > { %s2482_s26 = smov %s2288_s8  ;;  %s2483_s27 = smov %s2069_s28 }
 0x31c   : > { %s2484_s28 = smov %s2486_s7  ;;  %24 = sbr.rel (!%p22_p0) target bundleno = 11 (0xb), region = 122 }
 0x323   :  { %1261 = vsyncpa [#allocation4], 1 }
 0x324   :  { %1263 = vsyncpa [#allocation4 + $0x1], 1 }
 0x325   :  { %1264 = vsyncpa [#allocation7], 1 }
 0x326   :  { %1265 = vsyncpa [#allocation10], 1 }
 0x327   :  { %1266 = vsyncpa [#allocation5], 1 }
 0x328   :  { %1268 = vsyncpa [#allocation5 + $0x1], 1 }

</bundles_post_ra>
